<compile_context>
chip_gen: v5e
topology: v5e:2x2
jax: 0.10.0
libtpu: 0.0.40
codegen_flags: <defaults>
</compile_context>

<pallas_src>
import functools

import jax
import jax.numpy as jnp
from jax import lax
from jax.experimental import pallas as pl
from jax.experimental.pallas import tpu as pltpu


def _full_spec(shape):
    # whole-array block, grid=() -> index_map takes no args
    return pl.BlockSpec(shape, lambda: (0,) * len(shape))


# --------------------------------------------------------------------------
# Fused kernel: encoder GRU + cmd GRU + state GRU + critic / att_cmd heads.
# --------------------------------------------------------------------------
def _make_fused_kernel(T, B, Lc, C, H):
    BC = B * C
    f32 = jnp.float32

    def kernel(x_enc_ref, x_cmd_ref, state_h0_ref,
               enc_wih_ref, enc_whh_ref, enc_bih_ref, enc_bhh_ref,
               cmd_wih_ref, cmd_whh_ref, cmd_bih_ref, cmd_bhh_ref,
               st_wih_ref, st_whh_ref, st_bih_ref, st_bhh_ref,
               head_sw_ref, head_sb_ref, att_wc_ref,
               scores_ref, value_ref, state_out_ref,
               gi_enc_scr, gi_cmd_scr, cmd3_scr):
        # ---- input-side projections for every timestep: one GEMM per GRU ----
        # (b_ih folded in here; b_hh is added per-step after the h @ W_hh dot,
        #  which keeps exact torch.nn.GRU semantics for the n-gate.)
        gi_enc_scr[...] = (
            jnp.dot(x_enc_ref[...], enc_wih_ref[...], preferred_element_type=f32)
            + enc_bih_ref[...])
        gi_cmd_scr[...] = (
            jnp.dot(x_cmd_ref[...], cmd_wih_ref[...], preferred_element_type=f32)
            + cmd_bih_ref[...])

        enc_whh = enc_whh_ref[...]
        enc_bhh = enc_bhh_ref[...]
        cmd_whh = cmd_whh_ref[...]
        cmd_bhh = cmd_bhh_ref[...]

        def gru_step(gi, h, whh, bhh):
            # gi / gh: (rows, 3H), gates [r | z | n] along the lane axis.
            gh = jnp.dot(h, whh, preferred_element_type=f32) + bhh
            r = jax.nn.sigmoid(gi[:, 0:H] + gh[:, 0:H])
            z = jax.nn.sigmoid(gi[:, H:2 * H] + gh[:, H:2 * H])
            n = jnp.tanh(gi[:, 2 * H:3 * H] + r * gh[:, 2 * H:3 * H])
            return (1.0 - z) * n + z * h

        # ---- interleaved, fully unrolled recurrences (independent chains) ----
        h_enc = jnp.zeros((B, H), f32)
        h_cmd = jnp.zeros((BC, H), f32)
        for t in range(max(T, Lc)):
            if t < T:
                gi = gi_enc_scr[pl.ds(t * B, B), :]
                h_enc = gru_step(gi, h_enc, enc_whh, enc_bhh)
            if t < Lc:
                gi = gi_cmd_scr[pl.ds(t * BC, BC), :]
                h_cmd = gru_step(gi, h_cmd, cmd_whh, cmd_bhh)

        # ---- state GRU: single step, input = encoder final hidden ----
        gi_st = (jnp.dot(h_enc, st_wih_ref[...], preferred_element_type=f32)
                 + st_bih_ref[...])
        state_new = gru_step(gi_st, state_h0_ref[...], st_whh_ref[...],
                             st_bhh_ref[...])
        state_out_ref[...] = state_new

        # ---- critic + att_cmd(state half): one MXU dot, cols [value | s_part]
        sdot = (jnp.dot(state_new, head_sw_ref[...], preferred_element_type=f32)
                + head_sb_ref[...])                      # (B, 2)
        value_ref[...] = sdot[:, 0:1]
        s_part = sdot[:, 1:2]                            # (B, 1)

        # ---- att_cmd(cmd half) + ReLU ----
        # regroup the flat (B*C, H) command encodings as (B, C, H) through a
        # tiny VMEM scratch (avoids an in-register reshape), then lane-reduce.
        for b in range(B):
            cmd3_scr[b] = h_cmd[b * C:(b + 1) * C, :]
        c_part = jnp.sum(cmd3_scr[...] * att_wc_ref[...][None], axis=-1)  # (B, C)
        scores_ref[...] = jnp.maximum(s_part + c_part, 0.0)

    return kernel


# --------------------------------------------------------------------------
# Parameters (deterministic, synthetic — shapes from the module __init__).
# GRU weights are stored pre-transposed and gate-concatenated: W_ih^T (Hin,3H),
# W_hh^T (H,3H), b_ih (1,3H), b_hh (1,3H), gate order [r, z, n].
# --------------------------------------------------------------------------
def init_params(key, vocab, hidden):
    ks = list(jax.random.split(key, 18))

    def u(k, shape, bound):
        return jax.random.uniform(k, shape, jnp.float32, -bound, bound)

    bh = 1.0 / float(hidden) ** 0.5
    ba = 1.0 / float(2 * hidden) ** 0.5

    def gru_params(k0, k1, k2, k3):
        return (u(k0, (hidden, 3 * hidden), bh),   # W_ih^T, gates concatenated
                u(k1, (hidden, 3 * hidden), bh),   # W_hh^T
                u(k2, (1, 3 * hidden), bh),        # b_ih
                u(k3, (1, 3 * hidden), bh))        # b_hh

    critic_w = u(ks[13], (hidden, 1), bh)          # critic weight (column)
    critic_b = u(ks[14], (1, 1), bh)
    att_ws = u(ks[15], (hidden, 1), ba)            # att_cmd, state-hidden half
    att_wc = u(ks[16], (1, hidden), ba)            # att_cmd, cmd-encoding half
    att_b = u(ks[17], (1, 1), ba)

    return dict(
        embedding=jax.random.normal(ks[0], (vocab, hidden), jnp.float32),
        enc=gru_params(ks[1], ks[2], ks[3], ks[4]),
        cmd=gru_params(ks[5], ks[6], ks[7], ks[8]),
        state=gru_params(ks[9], ks[10], ks[11], ks[12]),
        head_sw=jnp.concatenate([critic_w, att_ws], axis=1),   # (H, 2)
        head_sb=jnp.concatenate([critic_b, att_b], axis=1),    # (1, 2)
        att_wc=att_wc,                                         # (1, H)
    )


# --------------------------------------------------------------------------
# Forward pass (mirrors CommandScorerModel.forward; persistent hidden handled
# functionally: takes state_hidden, returns the new one).
# --------------------------------------------------------------------------
@jax.jit
def command_scorer_forward(params, obs, commands, state_hidden, sample_key):
    T, B = obs.shape
    _, Lc, C = commands.shape
    H = params["embedding"].shape[1]
    emb = params["embedding"]

    # embedding gathers (plain XLA); transpose folded into the gather index
    # order so the command embeddings come out time-major / batch-flattened.
    x_enc = emb[obs].reshape(T * B, H)                                # (T*B, H)
    cmd_idx = jnp.transpose(commands, (1, 0, 2)).reshape(Lc, B * C)   # (Lc, B*C)
    x_cmd = emb[cmd_idx].reshape(Lc * B * C, H)                       # (Lc*B*C, H)

    kernel = _make_fused_kernel(T, B, Lc, C, H)
    args = (x_enc, x_cmd, state_hidden,
            *params["enc"], *params["cmd"], *params["state"],
            params["head_sw"], params["head_sb"], params["att_wc"])

    scores, value, state_new = pl.pallas_call(
        kernel,
        out_shape=(jax.ShapeDtypeStruct((B, C), jnp.float32),
                   jax.ShapeDtypeStruct((B, 1), jnp.float32),
                   jax.ShapeDtypeStruct((B, H), jnp.float32)),
        in_specs=[_full_spec(a.shape) for a in args],
        out_specs=(_full_spec((B, C)), _full_spec((B, 1)), _full_spec((B, H))),
        scratch_shapes=[pltpu.VMEM((T * B, 3 * H), jnp.float32),
                        pltpu.VMEM((Lc * B * C, 3 * H), jnp.float32),
                        pltpu.VMEM((B, C, H), jnp.float32)],
    )(*args)

    # TODO(synk): torch.multinomial's RNG stream is not reproducible in JAX;
    # sample from the identical categorical distribution (softmax of the ReLU
    # scores) by passing the scores as logits directly.
    idx = jax.random.categorical(sample_key, scores, axis=-1)

    return (scores.reshape(1, B, C),
            idx.reshape(1, B, 1).astype(jnp.int32),
            value.reshape(1, B, 1),
            state_new)


# --------------------------------------------------------------------------
# Pure-JAX reference (for correctness check)
# --------------------------------------------------------------------------
def _gru_ref(x_seq, h0, wih, whh, bih, bhh):
    H = h0.shape[-1]

    def step(h, x_t):
        gi = x_t @ wih + bih
        gh = h @ whh + bhh
        r = jax.nn.sigmoid(gi[:, :H] + gh[:, :H])
        z = jax.nn.sigmoid(gi[:, H:2 * H] + gh[:, H:2 * H])
        n = jnp.tanh(gi[:, 2 * H:] + r * gh[:, 2 * H:])
        return (1.0 - z) * n + z * h, None

    h, _ = lax.scan(step, h0, x_seq)
    return h


def reference_forward(params, obs, commands, state_hidden):
    T, B = obs.shape
    _, Lc, C = commands.shape
    H = params["embedding"].shape[1]
    emb = params["embedding"]

    enc_h = _gru_ref(emb[obs], jnp.zeros((B, H), jnp.float32), *params["enc"])
    state_h = _gru_ref(enc_h[None], state_hidden, *params["state"])
    cmd_x = emb[jnp.transpose(commands, (1, 0, 2)).reshape(Lc, B * C)]
    cmd_last = _gru_ref(cmd_x, jnp.zeros((B * C, H), jnp.float32),
                        *params["cmd"]).reshape(B, C, H)
    sdot = state_h @ params["head_sw"] + params["head_sb"]
    value = sdot[:, 0:1]
    s_part = sdot[:, 1:2]
    c_part = jnp.sum(cmd_last * params["att_wc"][None], axis=-1)
    scores = jnp.maximum(s_part + c_part, 0.0)
    return scores.reshape(1, B, C), value.reshape(1, B, 1), state_h


if __name__ == "__main__":
    vocab, hidden = 64, 32
    T, B, Lc, C = 8, 2, 6, 4   # input_length, batch, cmd token length, nb_cmds

    root = jax.random.PRNGKey(0)
    kp, kobs, kcmd, ksample = jax.random.split(root, 4)

    params = init_params(kp, vocab, hidden)
    obs = jax.random.randint(kobs, (T, B), 0, vocab, dtype=jnp.int32)
    commands = jax.random.randint(kcmd, (B, Lc, C), 0, vocab, dtype=jnp.int32)
    # state_hidden as after reset_hidden(batch_size): zeros (1*B, H)
    state_hidden = jnp.zeros((B, hidden), jnp.float32)

    scores, index, value, new_state_hidden = command_scorer_forward(
        params, obs, commands, state_hidden, ksample)
    jax.block_until_ready((scores, index, value, new_state_hidden))

    # correctness check vs pure-JAX reference
    scores_ref, value_ref, state_ref = reference_forward(
        params, obs, commands, state_hidden)
    assert scores.shape == (1, B, C) and value.shape == (1, B, 1)
    assert index.shape == (1, B, 1)
    assert jnp.allclose(scores, scores_ref, atol=1e-4, rtol=1e-4)
    assert jnp.allclose(value, value_ref, atol=1e-4, rtol=1e-4)
    assert jnp.allclose(new_state_hidden, state_ref, atol=1e-4, rtol=1e-4)

    print("KERNEL_OK")
</pallas_src>

<mosaic_0001>
module attributes {stable_mosaic.version = 11 : i64} {
  func.func @kernel(%arg0: memref<16x32xf32, #tpu.memory_space<vmem>>, %arg1: memref<48x32xf32, #tpu.memory_space<vmem>>, %arg2: memref<2x32xf32, #tpu.memory_space<vmem>>, %arg3: memref<32x96xf32, #tpu.memory_space<vmem>>, %arg4: memref<32x96xf32, #tpu.memory_space<vmem>>, %arg5: memref<1x96xf32, #tpu.memory_space<vmem>>, %arg6: memref<1x96xf32, #tpu.memory_space<vmem>>, %arg7: memref<32x96xf32, #tpu.memory_space<vmem>>, %arg8: memref<32x96xf32, #tpu.memory_space<vmem>>, %arg9: memref<1x96xf32, #tpu.memory_space<vmem>>, %arg10: memref<1x96xf32, #tpu.memory_space<vmem>>, %arg11: memref<32x96xf32, #tpu.memory_space<vmem>>, %arg12: memref<32x96xf32, #tpu.memory_space<vmem>>, %arg13: memref<1x96xf32, #tpu.memory_space<vmem>>, %arg14: memref<1x96xf32, #tpu.memory_space<vmem>>, %arg15: memref<32x2xf32, #tpu.memory_space<vmem>>, %arg16: memref<1x2xf32, #tpu.memory_space<vmem>>, %arg17: memref<1x32xf32, #tpu.memory_space<vmem>>, %arg18: memref<2x4xf32, #tpu.memory_space<vmem>>, %arg19: memref<2x1xf32, #tpu.memory_space<vmem>>, %arg20: memref<2x32xf32, #tpu.memory_space<vmem>>, %arg21: memref<16x96xf32, #tpu.memory_space<vmem>>, %arg22: memref<48x96xf32, #tpu.memory_space<vmem>>, %arg23: memref<2x4x32xf32, #tpu.memory_space<vmem>>) attributes {dimension_semantics = [], scalar_prefetch = 0 : i64, scratch_operands = 3 : i64, tpu.core_type = #tpu.core_type<tc>} {
    %c0 = arith.constant 0 : index
    %c0_0 = arith.constant 0 : index
    %0 = vector.load %arg0[%c0, %c0_0] : memref<16x32xf32, #tpu.memory_space<vmem>>, vector<16x32xf32>
    %c0_1 = arith.constant 0 : index
    %c0_2 = arith.constant 0 : index
    %1 = vector.load %arg3[%c0_1, %c0_2] : memref<32x96xf32, #tpu.memory_space<vmem>>, vector<32x96xf32>
    %cst = arith.constant dense<0.000000e+00> : vector<16x96xf32>
    %2 = tpu.matmul %0, %1, %cst {dimension_numbers = #tpu.dot_dimension_numbers<[1], [0], [0], [1], [0, 0, 1, 1], [], []>} : vector<16x32xf32>, vector<32x96xf32>, vector<16x96xf32> -> vector<16x96xf32>
    %c0_3 = arith.constant 0 : index
    %c0_4 = arith.constant 0 : index
    %3 = vector.load %arg5[%c0_3, %c0_4] : memref<1x96xf32, #tpu.memory_space<vmem>>, vector<1x96xf32>
    %4 = vector.broadcast %3 : vector<1x96xf32> to vector<16x96xf32>
    %5 = arith.addf %2, %4 : vector<16x96xf32>
    %c0_5 = arith.constant 0 : index
    %c0_6 = arith.constant 0 : index
    %6 = vector.load %arg21[%c0_5, %c0_6] : memref<16x96xf32, #tpu.memory_space<vmem>>, vector<16x96xf32>
    tpu.vector_store %arg21[%c0_5, %c0_6], %5 {strides = array<i32>} : memref<16x96xf32, #tpu.memory_space<vmem>>, vector<16x96xf32>,
    %c0_7 = arith.constant 0 : index
    %c0_8 = arith.constant 0 : index
    %7 = vector.load %arg1[%c0_7, %c0_8] : memref<48x32xf32, #tpu.memory_space<vmem>>, vector<48x32xf32>
    %c0_9 = arith.constant 0 : index
    %c0_10 = arith.constant 0 : index
    %8 = vector.load %arg7[%c0_9, %c0_10] : memref<32x96xf32, #tpu.memory_space<vmem>>, vector<32x96xf32>
    %cst_11 = arith.constant dense<0.000000e+00> : vector<48x96xf32>
    %9 = tpu.matmul %7, %8, %cst_11 {dimension_numbers = #tpu.dot_dimension_numbers<[1], [0], [0], [1], [0, 0, 1, 1], [], []>} : vector<48x32xf32>, vector<32x96xf32>, vector<48x96xf32> -> vector<48x96xf32>
    %c0_12 = arith.constant 0 : index
    %c0_13 = arith.constant 0 : index
    %10 = vector.load %arg9[%c0_12, %c0_13] : memref<1x96xf32, #tpu.memory_space<vmem>>, vector<1x96xf32>
    %11 = vector.broadcast %10 : vector<1x96xf32> to vector<48x96xf32>
    %12 = arith.addf %9, %11 : vector<48x96xf32>
    %c0_14 = arith.constant 0 : index
    %c0_15 = arith.constant 0 : index
    %13 = vector.load %arg22[%c0_14, %c0_15] : memref<48x96xf32, #tpu.memory_space<vmem>>, vector<48x96xf32>
    tpu.vector_store %arg22[%c0_14, %c0_15], %12 {strides = array<i32>} : memref<48x96xf32, #tpu.memory_space<vmem>>, vector<48x96xf32>,
    %c0_16 = arith.constant 0 : index
    %c0_17 = arith.constant 0 : index
    %14 = vector.load %arg4[%c0_16, %c0_17] : memref<32x96xf32, #tpu.memory_space<vmem>>, vector<32x96xf32>
    %c0_18 = arith.constant 0 : index
    %c0_19 = arith.constant 0 : index
    %15 = vector.load %arg6[%c0_18, %c0_19] : memref<1x96xf32, #tpu.memory_space<vmem>>, vector<1x96xf32>
    %c0_20 = arith.constant 0 : index
    %c0_21 = arith.constant 0 : index
    %16 = vector.load %arg8[%c0_20, %c0_21] : memref<32x96xf32, #tpu.memory_space<vmem>>, vector<32x96xf32>
    %c0_22 = arith.constant 0 : index
    %c0_23 = arith.constant 0 : index
    %17 = vector.load %arg10[%c0_22, %c0_23] : memref<1x96xf32, #tpu.memory_space<vmem>>, vector<1x96xf32>
    %cst_24 = arith.constant 0.000000e+00 : f32
    %18 = vector.broadcast %cst_24 : f32 to vector<2x32xf32>
    %cst_25 = arith.constant 0.000000e+00 : f32
    %19 = vector.broadcast %cst_25 : f32 to vector<8x32xf32>
    %c0_26 = arith.constant 0 : index
    %c0_27 = arith.constant 0 : index
    %20 = vector.load %arg21[%c0_26, %c0_27] : memref<16x96xf32, #tpu.memory_space<vmem>>, vector<2x96xf32>
    %cst_28 = arith.constant dense<0.000000e+00> : vector<2x96xf32>
    %21 = tpu.matmul %18, %14, %cst_28 {dimension_numbers = #tpu.dot_dimension_numbers<[1], [0], [0], [1], [0, 0, 1, 1], [], []>} : vector<2x32xf32>, vector<32x96xf32>, vector<2x96xf32> -> vector<2x96xf32>
    %22 = vector.broadcast %15 : vector<1x96xf32> to vector<2x96xf32>
    %23 = arith.addf %21, %22 : vector<2x96xf32>
    %24 = vector.extract_strided_slice %20 {offsets = [0, 0], sizes = [2, 32], strides = [1, 1]} : vector<2x96xf32> to vector<2x32xf32>
    %25 = vector.extract_strided_slice %23 {offsets = [0, 0], sizes = [2, 32], strides = [1, 1]} : vector<2x96xf32> to vector<2x32xf32>
    %26 = arith.addf %24, %25 : vector<2x32xf32>
    %27 = arith.negf %26 : vector<2x32xf32>
    %28 = math.exp %27 : vector<2x32xf32>
    %cst_29 = arith.constant 1.000000e+00 : f32
    %29 = vector.broadcast %cst_29 : f32 to vector<2x32xf32>
    %30 = arith.addf %29, %28 : vector<2x32xf32>
    %31 = arith.divf %29, %30 : vector<2x32xf32>
    %32 = vector.extract_strided_slice %20 {offsets = [0, 32], sizes = [2, 32], strides = [1, 1]} : vector<2x96xf32> to vector<2x32xf32>
    %33 = vector.extract_strided_slice %23 {offsets = [0, 32], sizes = [2, 32], strides = [1, 1]} : vector<2x96xf32> to vector<2x32xf32>
    %34 = arith.addf %32, %33 : vector<2x32xf32>
    %35 = arith.negf %34 : vector<2x32xf32>
    %36 = math.exp %35 : vector<2x32xf32>
    %cst_30 = arith.constant 1.000000e+00 : f32
    %37 = vector.broadcast %cst_30 : f32 to vector<2x32xf32>
    %38 = arith.addf %37, %36 : vector<2x32xf32>
    %39 = arith.divf %37, %38 : vector<2x32xf32>
    %40 = vector.extract_strided_slice %20 {offsets = [0, 64], sizes = [2, 32], strides = [1, 1]} : vector<2x96xf32> to vector<2x32xf32>
    %41 = vector.extract_strided_slice %23 {offsets = [0, 64], sizes = [2, 32], strides = [1, 1]} : vector<2x96xf32> to vector<2x32xf32>
    %42 = arith.mulf %31, %41 : vector<2x32xf32>
    %43 = arith.addf %40, %42 : vector<2x32xf32>
    %44 = math.tanh %43 : vector<2x32xf32>
    %cst_31 = arith.constant 1.000000e+00 : f32
    %45 = vector.broadcast %cst_31 : f32 to vector<2x32xf32>
    %46 = arith.subf %45, %39 : vector<2x32xf32>
    %47 = arith.mulf %46, %44 : vector<2x32xf32>
    %48 = arith.mulf %39, %18 : vector<2x32xf32>
    %49 = arith.addf %47, %48 : vector<2x32xf32>
    %c0_32 = arith.constant 0 : index
    %c0_33 = arith.constant 0 : index
    %50 = vector.load %arg22[%c0_32, %c0_33] : memref<48x96xf32, #tpu.memory_space<vmem>>, vector<8x96xf32>
    %cst_34 = arith.constant dense<0.000000e+00> : vector<8x96xf32>
    %51 = tpu.matmul %19, %16, %cst_34 {dimension_numbers = #tpu.dot_dimension_numbers<[1], [0], [0], [1], [0, 0, 1, 1], [], []>} : vector<8x32xf32>, vector<32x96xf32>, vector<8x96xf32> -> vector<8x96xf32>
    %52 = vector.broadcast %17 : vector<1x96xf32> to vector<8x96xf32>
    %53 = arith.addf %51, %52 : vector<8x96xf32>
    %54 = vector.extract_strided_slice %50 {offsets = [0, 0], sizes = [8, 32], strides = [1, 1]} : vector<8x96xf32> to vector<8x32xf32>
    %55 = vector.extract_strided_slice %53 {offsets = [0, 0], sizes = [8, 32], strides = [1, 1]} : vector<8x96xf32> to vector<8x32xf32>
    %56 = arith.addf %54, %55 : vector<8x32xf32>
    %57 = arith.negf %56 : vector<8x32xf32>
    %58 = math.exp %57 : vector<8x32xf32>
    %cst_35 = arith.constant 1.000000e+00 : f32
    %59 = vector.broadcast %cst_35 : f32 to vector<8x32xf32>
    %60 = arith.addf %59, %58 : vector<8x32xf32>
    %61 = arith.divf %59, %60 : vector<8x32xf32>
    %62 = vector.extract_strided_slice %50 {offsets = [0, 32], sizes = [8, 32], strides = [1, 1]} : vector<8x96xf32> to vector<8x32xf32>
    %63 = vector.extract_strided_slice %53 {offsets = [0, 32], sizes = [8, 32], strides = [1, 1]} : vector<8x96xf32> to vector<8x32xf32>
    %64 = arith.addf %62, %63 : vector<8x32xf32>
    %65 = arith.negf %64 : vector<8x32xf32>
    %66 = math.exp %65 : vector<8x32xf32>
    %cst_36 = arith.constant 1.000000e+00 : f32
    %67 = vector.broadcast %cst_36 : f32 to vector<8x32xf32>
    %68 = arith.addf %67, %66 : vector<8x32xf32>
    %69 = arith.divf %67, %68 : vector<8x32xf32>
    %70 = vector.extract_strided_slice %50 {offsets = [0, 64], sizes = [8, 32], strides = [1, 1]} : vector<8x96xf32> to vector<8x32xf32>
    %71 = vector.extract_strided_slice %53 {offsets = [0, 64], sizes = [8, 32], strides = [1, 1]} : vector<8x96xf32> to vector<8x32xf32>
    %72 = arith.mulf %61, %71 : vector<8x32xf32>
    %73 = arith.addf %70, %72 : vector<8x32xf32>
    %74 = math.tanh %73 : vector<8x32xf32>
    %cst_37 = arith.constant 1.000000e+00 : f32
    %75 = vector.broadcast %cst_37 : f32 to vector<8x32xf32>
    %76 = arith.subf %75, %69 : vector<8x32xf32>
    %77 = arith.mulf %76, %74 : vector<8x32xf32>
    %78 = arith.mulf %69, %19 : vector<8x32xf32>
    %79 = arith.addf %77, %78 : vector<8x32xf32>
    %c2 = arith.constant 2 : index
    %c0_38 = arith.constant 0 : index
    %80 = vector.load %arg21[%c2, %c0_38] : memref<16x96xf32, #tpu.memory_space<vmem>>, vector<2x96xf32>
    %cst_39 = arith.constant dense<0.000000e+00> : vector<2x96xf32>
    %81 = tpu.matmul %49, %14, %cst_39 {dimension_numbers = #tpu.dot_dimension_numbers<[1], [0], [0], [1], [0, 0, 1, 1], [], []>} : vector<2x32xf32>, vector<32x96xf32>, vector<2x96xf32> -> vector<2x96xf32>
    %82 = vector.broadcast %15 : vector<1x96xf32> to vector<2x96xf32>
    %83 = arith.addf %81, %82 : vector<2x96xf32>
    %84 = vector.extract_strided_slice %80 {offsets = [0, 0], sizes = [2, 32], strides = [1, 1]} : vector<2x96xf32> to vector<2x32xf32>
    %85 = vector.extract_strided_slice %83 {offsets = [0, 0], sizes = [2, 32], strides = [1, 1]} : vector<2x96xf32> to vector<2x32xf32>
    %86 = arith.addf %84, %85 : vector<2x32xf32>
    %87 = arith.negf %86 : vector<2x32xf32>
    %88 = math.exp %87 : vector<2x32xf32>
    %cst_40 = arith.constant 1.000000e+00 : f32
    %89 = vector.broadcast %cst_40 : f32 to vector<2x32xf32>
    %90 = arith.addf %89, %88 : vector<2x32xf32>
    %91 = arith.divf %89, %90 : vector<2x32xf32>
    %92 = vector.extract_strided_slice %80 {offsets = [0, 32], sizes = [2, 32], strides = [1, 1]} : vector<2x96xf32> to vector<2x32xf32>
    %93 = vector.extract_strided_slice %83 {offsets = [0, 32], sizes = [2, 32], strides = [1, 1]} : vector<2x96xf32> to vector<2x32xf32>
    %94 = arith.addf %92, %93 : vector<2x32xf32>
    %95 = arith.negf %94 : vector<2x32xf32>
    %96 = math.exp %95 : vector<2x32xf32>
    %cst_41 = arith.constant 1.000000e+00 : f32
    %97 = vector.broadcast %cst_41 : f32 to vector<2x32xf32>
    %98 = arith.addf %97, %96 : vector<2x32xf32>
    %99 = arith.divf %97, %98 : vector<2x32xf32>
    %100 = vector.extract_strided_slice %80 {offsets = [0, 64], sizes = [2, 32], strides = [1, 1]} : vector<2x96xf32> to vector<2x32xf32>
    %101 = vector.extract_strided_slice %83 {offsets = [0, 64], sizes = [2, 32], strides = [1, 1]} : vector<2x96xf32> to vector<2x32xf32>
    %102 = arith.mulf %91, %101 : vector<2x32xf32>
    %103 = arith.addf %100, %102 : vector<2x32xf32>
    %104 = math.tanh %103 : vector<2x32xf32>
    %cst_42 = arith.constant 1.000000e+00 : f32
    %105 = vector.broadcast %cst_42 : f32 to vector<2x32xf32>
    %106 = arith.subf %105, %99 : vector<2x32xf32>
    %107 = arith.mulf %106, %104 : vector<2x32xf32>
    %108 = arith.mulf %99, %49 : vector<2x32xf32>
    %109 = arith.addf %107, %108 : vector<2x32xf32>
    %c8 = arith.constant 8 : index
    %c0_43 = arith.constant 0 : index
    %110 = vector.load %arg22[%c8, %c0_43] : memref<48x96xf32, #tpu.memory_space<vmem>>, vector<8x96xf32>
    %cst_44 = arith.constant dense<0.000000e+00> : vector<8x96xf32>
    %111 = tpu.matmul %79, %16, %cst_44 {dimension_numbers = #tpu.dot_dimension_numbers<[1], [0], [0], [1], [0, 0, 1, 1], [], []>} : vector<8x32xf32>, vector<32x96xf32>, vector<8x96xf32> -> vector<8x96xf32>
    %112 = vector.broadcast %17 : vector<1x96xf32> to vector<8x96xf32>
    %113 = arith.addf %111, %112 : vector<8x96xf32>
    %114 = vector.extract_strided_slice %110 {offsets = [0, 0], sizes = [8, 32], strides = [1, 1]} : vector<8x96xf32> to vector<8x32xf32>
    %115 = vector.extract_strided_slice %113 {offsets = [0, 0], sizes = [8, 32], strides = [1, 1]} : vector<8x96xf32> to vector<8x32xf32>
    %116 = arith.addf %114, %115 : vector<8x32xf32>
    %117 = arith.negf %116 : vector<8x32xf32>
    %118 = math.exp %117 : vector<8x32xf32>
    %cst_45 = arith.constant 1.000000e+00 : f32
    %119 = vector.broadcast %cst_45 : f32 to vector<8x32xf32>
    %120 = arith.addf %119, %118 : vector<8x32xf32>
    %121 = arith.divf %119, %120 : vector<8x32xf32>
    %122 = vector.extract_strided_slice %110 {offsets = [0, 32], sizes = [8, 32], strides = [1, 1]} : vector<8x96xf32> to vector<8x32xf32>
    %123 = vector.extract_strided_slice %113 {offsets = [0, 32], sizes = [8, 32], strides = [1, 1]} : vector<8x96xf32> to vector<8x32xf32>
    %124 = arith.addf %122, %123 : vector<8x32xf32>
    %125 = arith.negf %124 : vector<8x32xf32>
    %126 = math.exp %125 : vector<8x32xf32>
    %cst_46 = arith.constant 1.000000e+00 : f32
    %127 = vector.broadcast %cst_46 : f32 to vector<8x32xf32>
    %128 = arith.addf %127, %126 : vector<8x32xf32>
    %129 = arith.divf %127, %128 : vector<8x32xf32>
    %130 = vector.extract_strided_slice %110 {offsets = [0, 64], sizes = [8, 32], strides = [1, 1]} : vector<8x96xf32> to vector<8x32xf32>
    %131 = vector.extract_strided_slice %113 {offsets = [0, 64], sizes = [8, 32], strides = [1, 1]} : vector<8x96xf32> to vector<8x32xf32>
    %132 = arith.mulf %121, %131 : vector<8x32xf32>
    %133 = arith.addf %130, %132 : vector<8x32xf32>
    %134 = math.tanh %133 : vector<8x32xf32>
    %cst_47 = arith.constant 1.000000e+00 : f32
    %135 = vector.broadcast %cst_47 : f32 to vector<8x32xf32>
    %136 = arith.subf %135, %129 : vector<8x32xf32>
    %137 = arith.mulf %136, %134 : vector<8x32xf32>
    %138 = arith.mulf %129, %79 : vector<8x32xf32>
    %139 = arith.addf %137, %138 : vector<8x32xf32>
    %c4 = arith.constant 4 : index
    %c0_48 = arith.constant 0 : index
    %140 = vector.load %arg21[%c4, %c0_48] : memref<16x96xf32, #tpu.memory_space<vmem>>, vector<2x96xf32>
    %cst_49 = arith.constant dense<0.000000e+00> : vector<2x96xf32>
    %141 = tpu.matmul %109, %14, %cst_49 {dimension_numbers = #tpu.dot_dimension_numbers<[1], [0], [0], [1], [0, 0, 1, 1], [], []>} : vector<2x32xf32>, vector<32x96xf32>, vector<2x96xf32> -> vector<2x96xf32>
    %142 = vector.broadcast %15 : vector<1x96xf32> to vector<2x96xf32>
    %143 = arith.addf %141, %142 : vector<2x96xf32>
    %144 = vector.extract_strided_slice %140 {offsets = [0, 0], sizes = [2, 32], strides = [1, 1]} : vector<2x96xf32> to vector<2x32xf32>
    %145 = vector.extract_strided_slice %143 {offsets = [0, 0], sizes = [2, 32], strides = [1, 1]} : vector<2x96xf32> to vector<2x32xf32>
    %146 = arith.addf %144, %145 : vector<2x32xf32>
    %147 = arith.negf %146 : vector<2x32xf32>
    %148 = math.exp %147 : vector<2x32xf32>
    %cst_50 = arith.constant 1.000000e+00 : f32
    %149 = vector.broadcast %cst_50 : f32 to vector<2x32xf32>
    %150 = arith.addf %149, %148 : vector<2x32xf32>
    %151 = arith.divf %149, %150 : vector<2x32xf32>
    %152 = vector.extract_strided_slice %140 {offsets = [0, 32], sizes = [2, 32], strides = [1, 1]} : vector<2x96xf32> to vector<2x32xf32>
    %153 = vector.extract_strided_slice %143 {offsets = [0, 32], sizes = [2, 32], strides = [1, 1]} : vector<2x96xf32> to vector<2x32xf32>
    %154 = arith.addf %152, %153 : vector<2x32xf32>
    %155 = arith.negf %154 : vector<2x32xf32>
    %156 = math.exp %155 : vector<2x32xf32>
    %cst_51 = arith.constant 1.000000e+00 : f32
    %157 = vector.broadcast %cst_51 : f32 to vector<2x32xf32>
    %158 = arith.addf %157, %156 : vector<2x32xf32>
    %159 = arith.divf %157, %158 : vector<2x32xf32>
    %160 = vector.extract_strided_slice %140 {offsets = [0, 64], sizes = [2, 32], strides = [1, 1]} : vector<2x96xf32> to vector<2x32xf32>
    %161 = vector.extract_strided_slice %143 {offsets = [0, 64], sizes = [2, 32], strides = [1, 1]} : vector<2x96xf32> to vector<2x32xf32>
    %162 = arith.mulf %151, %161 : vector<2x32xf32>
    %163 = arith.addf %160, %162 : vector<2x32xf32>
    %164 = math.tanh %163 : vector<2x32xf32>
    %cst_52 = arith.constant 1.000000e+00 : f32
    %165 = vector.broadcast %cst_52 : f32 to vector<2x32xf32>
    %166 = arith.subf %165, %159 : vector<2x32xf32>
    %167 = arith.mulf %166, %164 : vector<2x32xf32>
    %168 = arith.mulf %159, %109 : vector<2x32xf32>
    %169 = arith.addf %167, %168 : vector<2x32xf32>
    %c16 = arith.constant 16 : index
    %c0_53 = arith.constant 0 : index
    %170 = vector.load %arg22[%c16, %c0_53] : memref<48x96xf32, #tpu.memory_space<vmem>>, vector<8x96xf32>
    %cst_54 = arith.constant dense<0.000000e+00> : vector<8x96xf32>
    %171 = tpu.matmul %139, %16, %cst_54 {dimension_numbers = #tpu.dot_dimension_numbers<[1], [0], [0], [1], [0, 0, 1, 1], [], []>} : vector<8x32xf32>, vector<32x96xf32>, vector<8x96xf32> -> vector<8x96xf32>
    %172 = vector.broadcast %17 : vector<1x96xf32> to vector<8x96xf32>
    %173 = arith.addf %171, %172 : vector<8x96xf32>
    %174 = vector.extract_strided_slice %170 {offsets = [0, 0], sizes = [8, 32], strides = [1, 1]} : vector<8x96xf32> to vector<8x32xf32>
    %175 = vector.extract_strided_slice %173 {offsets = [0, 0], sizes = [8, 32], strides = [1, 1]} : vector<8x96xf32> to vector<8x32xf32>
    %176 = arith.addf %174, %175 : vector<8x32xf32>
    %177 = arith.negf %176 : vector<8x32xf32>
    %178 = math.exp %177 : vector<8x32xf32>
    %cst_55 = arith.constant 1.000000e+00 : f32
    %179 = vector.broadcast %cst_55 : f32 to vector<8x32xf32>
    %180 = arith.addf %179, %178 : vector<8x32xf32>
    %181 = arith.divf %179, %180 : vector<8x32xf32>
    %182 = vector.extract_strided_slice %170 {offsets = [0, 32], sizes = [8, 32], strides = [1, 1]} : vector<8x96xf32> to vector<8x32xf32>
    %183 = vector.extract_strided_slice %173 {offsets = [0, 32], sizes = [8, 32], strides = [1, 1]} : vector<8x96xf32> to vector<8x32xf32>
    %184 = arith.addf %182, %183 : vector<8x32xf32>
    %185 = arith.negf %184 : vector<8x32xf32>
    %186 = math.exp %185 : vector<8x32xf32>
    %cst_56 = arith.constant 1.000000e+00 : f32
    %187 = vector.broadcast %cst_56 : f32 to vector<8x32xf32>
    %188 = arith.addf %187, %186 : vector<8x32xf32>
    %189 = arith.divf %187, %188 : vector<8x32xf32>
    %190 = vector.extract_strided_slice %170 {offsets = [0, 64], sizes = [8, 32], strides = [1, 1]} : vector<8x96xf32> to vector<8x32xf32>
    %191 = vector.extract_strided_slice %173 {offsets = [0, 64], sizes = [8, 32], strides = [1, 1]} : vector<8x96xf32> to vector<8x32xf32>
    %192 = arith.mulf %181, %191 : vector<8x32xf32>
    %193 = arith.addf %190, %192 : vector<8x32xf32>
    %194 = math.tanh %193 : vector<8x32xf32>
    %cst_57 = arith.constant 1.000000e+00 : f32
    %195 = vector.broadcast %cst_57 : f32 to vector<8x32xf32>
    %196 = arith.subf %195, %189 : vector<8x32xf32>
    %197 = arith.mulf %196, %194 : vector<8x32xf32>
    %198 = arith.mulf %189, %139 : vector<8x32xf32>
    %199 = arith.addf %197, %198 : vector<8x32xf32>
    %c6 = arith.constant 6 : index
    %c0_58 = arith.constant 0 : index
    %200 = vector.load %arg21[%c6, %c0_58] : memref<16x96xf32, #tpu.memory_space<vmem>>, vector<2x96xf32>
    %cst_59 = arith.constant dense<0.000000e+00> : vector<2x96xf32>
    %201 = tpu.matmul %169, %14, %cst_59 {dimension_numbers = #tpu.dot_dimension_numbers<[1], [0], [0], [1], [0, 0, 1, 1], [], []>} : vector<2x32xf32>, vector<32x96xf32>, vector<2x96xf32> -> vector<2x96xf32>
    %202 = vector.broadcast %15 : vector<1x96xf32> to vector<2x96xf32>
    %203 = arith.addf %201, %202 : vector<2x96xf32>
    %204 = vector.extract_strided_slice %200 {offsets = [0, 0], sizes = [2, 32], strides = [1, 1]} : vector<2x96xf32> to vector<2x32xf32>
    %205 = vector.extract_strided_slice %203 {offsets = [0, 0], sizes = [2, 32], strides = [1, 1]} : vector<2x96xf32> to vector<2x32xf32>
    %206 = arith.addf %204, %205 : vector<2x32xf32>
    %207 = arith.negf %206 : vector<2x32xf32>
    %208 = math.exp %207 : vector<2x32xf32>
    %cst_60 = arith.constant 1.000000e+00 : f32
    %209 = vector.broadcast %cst_60 : f32 to vector<2x32xf32>
    %210 = arith.addf %209, %208 : vector<2x32xf32>
    %211 = arith.divf %209, %210 : vector<2x32xf32>
    %212 = vector.extract_strided_slice %200 {offsets = [0, 32], sizes = [2, 32], strides = [1, 1]} : vector<2x96xf32> to vector<2x32xf32>
    %213 = vector.extract_strided_slice %203 {offsets = [0, 32], sizes = [2, 32], strides = [1, 1]} : vector<2x96xf32> to vector<2x32xf32>
    %214 = arith.addf %212, %213 : vector<2x32xf32>
    %215 = arith.negf %214 : vector<2x32xf32>
    %216 = math.exp %215 : vector<2x32xf32>
    %cst_61 = arith.constant 1.000000e+00 : f32
    %217 = vector.broadcast %cst_61 : f32 to vector<2x32xf32>
    %218 = arith.addf %217, %216 : vector<2x32xf32>
    %219 = arith.divf %217, %218 : vector<2x32xf32>
    %220 = vector.extract_strided_slice %200 {offsets = [0, 64], sizes = [2, 32], strides = [1, 1]} : vector<2x96xf32> to vector<2x32xf32>
    %221 = vector.extract_strided_slice %203 {offsets = [0, 64], sizes = [2, 32], strides = [1, 1]} : vector<2x96xf32> to vector<2x32xf32>
    %222 = arith.mulf %211, %221 : vector<2x32xf32>
    %223 = arith.addf %220, %222 : vector<2x32xf32>
    %224 = math.tanh %223 : vector<2x32xf32>
    %cst_62 = arith.constant 1.000000e+00 : f32
    %225 = vector.broadcast %cst_62 : f32 to vector<2x32xf32>
    %226 = arith.subf %225, %219 : vector<2x32xf32>
    %227 = arith.mulf %226, %224 : vector<2x32xf32>
    %228 = arith.mulf %219, %169 : vector<2x32xf32>
    %229 = arith.addf %227, %228 : vector<2x32xf32>
    %c24 = arith.constant 24 : index
    %c0_63 = arith.constant 0 : index
    %230 = vector.load %arg22[%c24, %c0_63] : memref<48x96xf32, #tpu.memory_space<vmem>>, vector<8x96xf32>
    %cst_64 = arith.constant dense<0.000000e+00> : vector<8x96xf32>
    %231 = tpu.matmul %199, %16, %cst_64 {dimension_numbers = #tpu.dot_dimension_numbers<[1], [0], [0], [1], [0, 0, 1, 1], [], []>} : vector<8x32xf32>, vector<32x96xf32>, vector<8x96xf32> -> vector<8x96xf32>
    %232 = vector.broadcast %17 : vector<1x96xf32> to vector<8x96xf32>
    %233 = arith.addf %231, %232 : vector<8x96xf32>
    %234 = vector.extract_strided_slice %230 {offsets = [0, 0], sizes = [8, 32], strides = [1, 1]} : vector<8x96xf32> to vector<8x32xf32>
    %235 = vector.extract_strided_slice %233 {offsets = [0, 0], sizes = [8, 32], strides = [1, 1]} : vector<8x96xf32> to vector<8x32xf32>
    %236 = arith.addf %234, %235 : vector<8x32xf32>
    %237 = arith.negf %236 : vector<8x32xf32>
    %238 = math.exp %237 : vector<8x32xf32>
    %cst_65 = arith.constant 1.000000e+00 : f32
    %239 = vector.broadcast %cst_65 : f32 to vector<8x32xf32>
    %240 = arith.addf %239, %238 : vector<8x32xf32>
    %241 = arith.divf %239, %240 : vector<8x32xf32>
    %242 = vector.extract_strided_slice %230 {offsets = [0, 32], sizes = [8, 32], strides = [1, 1]} : vector<8x96xf32> to vector<8x32xf32>
    %243 = vector.extract_strided_slice %233 {offsets = [0, 32], sizes = [8, 32], strides = [1, 1]} : vector<8x96xf32> to vector<8x32xf32>
    %244 = arith.addf %242, %243 : vector<8x32xf32>
    %245 = arith.negf %244 : vector<8x32xf32>
    %246 = math.exp %245 : vector<8x32xf32>
    %cst_66 = arith.constant 1.000000e+00 : f32
    %247 = vector.broadcast %cst_66 : f32 to vector<8x32xf32>
    %248 = arith.addf %247, %246 : vector<8x32xf32>
    %249 = arith.divf %247, %248 : vector<8x32xf32>
    %250 = vector.extract_strided_slice %230 {offsets = [0, 64], sizes = [8, 32], strides = [1, 1]} : vector<8x96xf32> to vector<8x32xf32>
    %251 = vector.extract_strided_slice %233 {offsets = [0, 64], sizes = [8, 32], strides = [1, 1]} : vector<8x96xf32> to vector<8x32xf32>
    %252 = arith.mulf %241, %251 : vector<8x32xf32>
    %253 = arith.addf %250, %252 : vector<8x32xf32>
    %254 = math.tanh %253 : vector<8x32xf32>
    %cst_67 = arith.constant 1.000000e+00 : f32
    %255 = vector.broadcast %cst_67 : f32 to vector<8x32xf32>
    %256 = arith.subf %255, %249 : vector<8x32xf32>
    %257 = arith.mulf %256, %254 : vector<8x32xf32>
    %258 = arith.mulf %249, %199 : vector<8x32xf32>
    %259 = arith.addf %257, %258 : vector<8x32xf32>
    %c8_68 = arith.constant 8 : index
    %c0_69 = arith.constant 0 : index
    %260 = vector.load %arg21[%c8_68, %c0_69] : memref<16x96xf32, #tpu.memory_space<vmem>>, vector<2x96xf32>
    %cst_70 = arith.constant dense<0.000000e+00> : vector<2x96xf32>
    %261 = tpu.matmul %229, %14, %cst_70 {dimension_numbers = #tpu.dot_dimension_numbers<[1], [0], [0], [1], [0, 0, 1, 1], [], []>} : vector<2x32xf32>, vector<32x96xf32>, vector<2x96xf32> -> vector<2x96xf32>
    %262 = vector.broadcast %15 : vector<1x96xf32> to vector<2x96xf32>
    %263 = arith.addf %261, %262 : vector<2x96xf32>
    %264 = vector.extract_strided_slice %260 {offsets = [0, 0], sizes = [2, 32], strides = [1, 1]} : vector<2x96xf32> to vector<2x32xf32>
    %265 = vector.extract_strided_slice %263 {offsets = [0, 0], sizes = [2, 32], strides = [1, 1]} : vector<2x96xf32> to vector<2x32xf32>
    %266 = arith.addf %264, %265 : vector<2x32xf32>
    %267 = arith.negf %266 : vector<2x32xf32>
    %268 = math.exp %267 : vector<2x32xf32>
    %cst_71 = arith.constant 1.000000e+00 : f32
    %269 = vector.broadcast %cst_71 : f32 to vector<2x32xf32>
    %270 = arith.addf %269, %268 : vector<2x32xf32>
    %271 = arith.divf %269, %270 : vector<2x32xf32>
    %272 = vector.extract_strided_slice %260 {offsets = [0, 32], sizes = [2, 32], strides = [1, 1]} : vector<2x96xf32> to vector<2x32xf32>
    %273 = vector.extract_strided_slice %263 {offsets = [0, 32], sizes = [2, 32], strides = [1, 1]} : vector<2x96xf32> to vector<2x32xf32>
    %274 = arith.addf %272, %273 : vector<2x32xf32>
    %275 = arith.negf %274 : vector<2x32xf32>
    %276 = math.exp %275 : vector<2x32xf32>
    %cst_72 = arith.constant 1.000000e+00 : f32
    %277 = vector.broadcast %cst_72 : f32 to vector<2x32xf32>
    %278 = arith.addf %277, %276 : vector<2x32xf32>
    %279 = arith.divf %277, %278 : vector<2x32xf32>
    %280 = vector.extract_strided_slice %260 {offsets = [0, 64], sizes = [2, 32], strides = [1, 1]} : vector<2x96xf32> to vector<2x32xf32>
    %281 = vector.extract_strided_slice %263 {offsets = [0, 64], sizes = [2, 32], strides = [1, 1]} : vector<2x96xf32> to vector<2x32xf32>
    %282 = arith.mulf %271, %281 : vector<2x32xf32>
    %283 = arith.addf %280, %282 : vector<2x32xf32>
    %284 = math.tanh %283 : vector<2x32xf32>
    %cst_73 = arith.constant 1.000000e+00 : f32
    %285 = vector.broadcast %cst_73 : f32 to vector<2x32xf32>
    %286 = arith.subf %285, %279 : vector<2x32xf32>
    %287 = arith.mulf %286, %284 : vector<2x32xf32>
    %288 = arith.mulf %279, %229 : vector<2x32xf32>
    %289 = arith.addf %287, %288 : vector<2x32xf32>
    %c32 = arith.constant 32 : index
    %c0_74 = arith.constant 0 : index
    %290 = vector.load %arg22[%c32, %c0_74] : memref<48x96xf32, #tpu.memory_space<vmem>>, vector<8x96xf32>
    %cst_75 = arith.constant dense<0.000000e+00> : vector<8x96xf32>
    %291 = tpu.matmul %259, %16, %cst_75 {dimension_numbers = #tpu.dot_dimension_numbers<[1], [0], [0], [1], [0, 0, 1, 1], [], []>} : vector<8x32xf32>, vector<32x96xf32>, vector<8x96xf32> -> vector<8x96xf32>
    %292 = vector.broadcast %17 : vector<1x96xf32> to vector<8x96xf32>
    %293 = arith.addf %291, %292 : vector<8x96xf32>
    %294 = vector.extract_strided_slice %290 {offsets = [0, 0], sizes = [8, 32], strides = [1, 1]} : vector<8x96xf32> to vector<8x32xf32>
    %295 = vector.extract_strided_slice %293 {offsets = [0, 0], sizes = [8, 32], strides = [1, 1]} : vector<8x96xf32> to vector<8x32xf32>
    %296 = arith.addf %294, %295 : vector<8x32xf32>
    %297 = arith.negf %296 : vector<8x32xf32>
    %298 = math.exp %297 : vector<8x32xf32>
    %cst_76 = arith.constant 1.000000e+00 : f32
    %299 = vector.broadcast %cst_76 : f32 to vector<8x32xf32>
    %300 = arith.addf %299, %298 : vector<8x32xf32>
    %301 = arith.divf %299, %300 : vector<8x32xf32>
    %302 = vector.extract_strided_slice %290 {offsets = [0, 32], sizes = [8, 32], strides = [1, 1]} : vector<8x96xf32> to vector<8x32xf32>
    %303 = vector.extract_strided_slice %293 {offsets = [0, 32], sizes = [8, 32], strides = [1, 1]} : vector<8x96xf32> to vector<8x32xf32>
    %304 = arith.addf %302, %303 : vector<8x32xf32>
    %305 = arith.negf %304 : vector<8x32xf32>
    %306 = math.exp %305 : vector<8x32xf32>
    %cst_77 = arith.constant 1.000000e+00 : f32
    %307 = vector.broadcast %cst_77 : f32 to vector<8x32xf32>
    %308 = arith.addf %307, %306 : vector<8x32xf32>
    %309 = arith.divf %307, %308 : vector<8x32xf32>
    %310 = vector.extract_strided_slice %290 {offsets = [0, 64], sizes = [8, 32], strides = [1, 1]} : vector<8x96xf32> to vector<8x32xf32>
    %311 = vector.extract_strided_slice %293 {offsets = [0, 64], sizes = [8, 32], strides = [1, 1]} : vector<8x96xf32> to vector<8x32xf32>
    %312 = arith.mulf %301, %311 : vector<8x32xf32>
    %313 = arith.addf %310, %312 : vector<8x32xf32>
    %314 = math.tanh %313 : vector<8x32xf32>
    %cst_78 = arith.constant 1.000000e+00 : f32
    %315 = vector.broadcast %cst_78 : f32 to vector<8x32xf32>
    %316 = arith.subf %315, %309 : vector<8x32xf32>
    %317 = arith.mulf %316, %314 : vector<8x32xf32>
    %318 = arith.mulf %309, %259 : vector<8x32xf32>
    %319 = arith.addf %317, %318 : vector<8x32xf32>
    %c10 = arith.constant 10 : index
    %c0_79 = arith.constant 0 : index
    %320 = vector.load %arg21[%c10, %c0_79] : memref<16x96xf32, #tpu.memory_space<vmem>>, vector<2x96xf32>
    %cst_80 = arith.constant dense<0.000000e+00> : vector<2x96xf32>
    %321 = tpu.matmul %289, %14, %cst_80 {dimension_numbers = #tpu.dot_dimension_numbers<[1], [0], [0], [1], [0, 0, 1, 1], [], []>} : vector<2x32xf32>, vector<32x96xf32>, vector<2x96xf32> -> vector<2x96xf32>
    %322 = vector.broadcast %15 : vector<1x96xf32> to vector<2x96xf32>
    %323 = arith.addf %321, %322 : vector<2x96xf32>
    %324 = vector.extract_strided_slice %320 {offsets = [0, 0], sizes = [2, 32], strides = [1, 1]} : vector<2x96xf32> to vector<2x32xf32>
    %325 = vector.extract_strided_slice %323 {offsets = [0, 0], sizes = [2, 32], strides = [1, 1]} : vector<2x96xf32> to vector<2x32xf32>
    %326 = arith.addf %324, %325 : vector<2x32xf32>
    %327 = arith.negf %326 : vector<2x32xf32>
    %328 = math.exp %327 : vector<2x32xf32>
    %cst_81 = arith.constant 1.000000e+00 : f32
    %329 = vector.broadcast %cst_81 : f32 to vector<2x32xf32>
    %330 = arith.addf %329, %328 : vector<2x32xf32>
    %331 = arith.divf %329, %330 : vector<2x32xf32>
    %332 = vector.extract_strided_slice %320 {offsets = [0, 32], sizes = [2, 32], strides = [1, 1]} : vector<2x96xf32> to vector<2x32xf32>
    %333 = vector.extract_strided_slice %323 {offsets = [0, 32], sizes = [2, 32], strides = [1, 1]} : vector<2x96xf32> to vector<2x32xf32>
    %334 = arith.addf %332, %333 : vector<2x32xf32>
    %335 = arith.negf %334 : vector<2x32xf32>
    %336 = math.exp %335 : vector<2x32xf32>
    %cst_82 = arith.constant 1.000000e+00 : f32
    %337 = vector.broadcast %cst_82 : f32 to vector<2x32xf32>
    %338 = arith.addf %337, %336 : vector<2x32xf32>
    %339 = arith.divf %337, %338 : vector<2x32xf32>
    %340 = vector.extract_strided_slice %320 {offsets = [0, 64], sizes = [2, 32], strides = [1, 1]} : vector<2x96xf32> to vector<2x32xf32>
    %341 = vector.extract_strided_slice %323 {offsets = [0, 64], sizes = [2, 32], strides = [1, 1]} : vector<2x96xf32> to vector<2x32xf32>
    %342 = arith.mulf %331, %341 : vector<2x32xf32>
    %343 = arith.addf %340, %342 : vector<2x32xf32>
    %344 = math.tanh %343 : vector<2x32xf32>
    %cst_83 = arith.constant 1.000000e+00 : f32
    %345 = vector.broadcast %cst_83 : f32 to vector<2x32xf32>
    %346 = arith.subf %345, %339 : vector<2x32xf32>
    %347 = arith.mulf %346, %344 : vector<2x32xf32>
    %348 = arith.mulf %339, %289 : vector<2x32xf32>
    %349 = arith.addf %347, %348 : vector<2x32xf32>
    %c40 = arith.constant 40 : index
    %c0_84 = arith.constant 0 : index
    %350 = vector.load %arg22[%c40, %c0_84] : memref<48x96xf32, #tpu.memory_space<vmem>>, vector<8x96xf32>
    %cst_85 = arith.constant dense<0.000000e+00> : vector<8x96xf32>
    %351 = tpu.matmul %319, %16, %cst_85 {dimension_numbers = #tpu.dot_dimension_numbers<[1], [0], [0], [1], [0, 0, 1, 1], [], []>} : vector<8x32xf32>, vector<32x96xf32>, vector<8x96xf32> -> vector<8x96xf32>
    %352 = vector.broadcast %17 : vector<1x96xf32> to vector<8x96xf32>
    %353 = arith.addf %351, %352 : vector<8x96xf32>
    %354 = vector.extract_strided_slice %350 {offsets = [0, 0], sizes = [8, 32], strides = [1, 1]} : vector<8x96xf32> to vector<8x32xf32>
    %355 = vector.extract_strided_slice %353 {offsets = [0, 0], sizes = [8, 32], strides = [1, 1]} : vector<8x96xf32> to vector<8x32xf32>
    %356 = arith.addf %354, %355 : vector<8x32xf32>
    %357 = arith.negf %356 : vector<8x32xf32>
    %358 = math.exp %357 : vector<8x32xf32>
    %cst_86 = arith.constant 1.000000e+00 : f32
    %359 = vector.broadcast %cst_86 : f32 to vector<8x32xf32>
    %360 = arith.addf %359, %358 : vector<8x32xf32>
    %361 = arith.divf %359, %360 : vector<8x32xf32>
    %362 = vector.extract_strided_slice %350 {offsets = [0, 32], sizes = [8, 32], strides = [1, 1]} : vector<8x96xf32> to vector<8x32xf32>
    %363 = vector.extract_strided_slice %353 {offsets = [0, 32], sizes = [8, 32], strides = [1, 1]} : vector<8x96xf32> to vector<8x32xf32>
    %364 = arith.addf %362, %363 : vector<8x32xf32>
    %365 = arith.negf %364 : vector<8x32xf32>
    %366 = math.exp %365 : vector<8x32xf32>
    %cst_87 = arith.constant 1.000000e+00 : f32
    %367 = vector.broadcast %cst_87 : f32 to vector<8x32xf32>
    %368 = arith.addf %367, %366 : vector<8x32xf32>
    %369 = arith.divf %367, %368 : vector<8x32xf32>
    %370 = vector.extract_strided_slice %350 {offsets = [0, 64], sizes = [8, 32], strides = [1, 1]} : vector<8x96xf32> to vector<8x32xf32>
    %371 = vector.extract_strided_slice %353 {offsets = [0, 64], sizes = [8, 32], strides = [1, 1]} : vector<8x96xf32> to vector<8x32xf32>
    %372 = arith.mulf %361, %371 : vector<8x32xf32>
    %373 = arith.addf %370, %372 : vector<8x32xf32>
    %374 = math.tanh %373 : vector<8x32xf32>
    %cst_88 = arith.constant 1.000000e+00 : f32
    %375 = vector.broadcast %cst_88 : f32 to vector<8x32xf32>
    %376 = arith.subf %375, %369 : vector<8x32xf32>
    %377 = arith.mulf %376, %374 : vector<8x32xf32>
    %378 = arith.mulf %369, %319 : vector<8x32xf32>
    %379 = arith.addf %377, %378 : vector<8x32xf32>
    %c12 = arith.constant 12 : index
    %c0_89 = arith.constant 0 : index
    %380 = vector.load %arg21[%c12, %c0_89] : memref<16x96xf32, #tpu.memory_space<vmem>>, vector<2x96xf32>
    %cst_90 = arith.constant dense<0.000000e+00> : vector<2x96xf32>
    %381 = tpu.matmul %349, %14, %cst_90 {dimension_numbers = #tpu.dot_dimension_numbers<[1], [0], [0], [1], [0, 0, 1, 1], [], []>} : vector<2x32xf32>, vector<32x96xf32>, vector<2x96xf32> -> vector<2x96xf32>
    %382 = vector.broadcast %15 : vector<1x96xf32> to vector<2x96xf32>
    %383 = arith.addf %381, %382 : vector<2x96xf32>
    %384 = vector.extract_strided_slice %380 {offsets = [0, 0], sizes = [2, 32], strides = [1, 1]} : vector<2x96xf32> to vector<2x32xf32>
    %385 = vector.extract_strided_slice %383 {offsets = [0, 0], sizes = [2, 32], strides = [1, 1]} : vector<2x96xf32> to vector<2x32xf32>
    %386 = arith.addf %384, %385 : vector<2x32xf32>
    %387 = arith.negf %386 : vector<2x32xf32>
    %388 = math.exp %387 : vector<2x32xf32>
    %cst_91 = arith.constant 1.000000e+00 : f32
    %389 = vector.broadcast %cst_91 : f32 to vector<2x32xf32>
    %390 = arith.addf %389, %388 : vector<2x32xf32>
    %391 = arith.divf %389, %390 : vector<2x32xf32>
    %392 = vector.extract_strided_slice %380 {offsets = [0, 32], sizes = [2, 32], strides = [1, 1]} : vector<2x96xf32> to vector<2x32xf32>
    %393 = vector.extract_strided_slice %383 {offsets = [0, 32], sizes = [2, 32], strides = [1, 1]} : vector<2x96xf32> to vector<2x32xf32>
    %394 = arith.addf %392, %393 : vector<2x32xf32>
    %395 = arith.negf %394 : vector<2x32xf32>
    %396 = math.exp %395 : vector<2x32xf32>
    %cst_92 = arith.constant 1.000000e+00 : f32
    %397 = vector.broadcast %cst_92 : f32 to vector<2x32xf32>
    %398 = arith.addf %397, %396 : vector<2x32xf32>
    %399 = arith.divf %397, %398 : vector<2x32xf32>
    %400 = vector.extract_strided_slice %380 {offsets = [0, 64], sizes = [2, 32], strides = [1, 1]} : vector<2x96xf32> to vector<2x32xf32>
    %401 = vector.extract_strided_slice %383 {offsets = [0, 64], sizes = [2, 32], strides = [1, 1]} : vector<2x96xf32> to vector<2x32xf32>
    %402 = arith.mulf %391, %401 : vector<2x32xf32>
    %403 = arith.addf %400, %402 : vector<2x32xf32>
    %404 = math.tanh %403 : vector<2x32xf32>
    %cst_93 = arith.constant 1.000000e+00 : f32
    %405 = vector.broadcast %cst_93 : f32 to vector<2x32xf32>
    %406 = arith.subf %405, %399 : vector<2x32xf32>
    %407 = arith.mulf %406, %404 : vector<2x32xf32>
    %408 = arith.mulf %399, %349 : vector<2x32xf32>
    %409 = arith.addf %407, %408 : vector<2x32xf32>
    %c14 = arith.constant 14 : index
    %c0_94 = arith.constant 0 : index
    %410 = vector.load %arg21[%c14, %c0_94] : memref<16x96xf32, #tpu.memory_space<vmem>>, vector<2x96xf32>
    %cst_95 = arith.constant dense<0.000000e+00> : vector<2x96xf32>
    %411 = tpu.matmul %409, %14, %cst_95 {dimension_numbers = #tpu.dot_dimension_numbers<[1], [0], [0], [1], [0, 0, 1, 1], [], []>} : vector<2x32xf32>, vector<32x96xf32>, vector<2x96xf32> -> vector<2x96xf32>
    %412 = vector.broadcast %15 : vector<1x96xf32> to vector<2x96xf32>
    %413 = arith.addf %411, %412 : vector<2x96xf32>
    %414 = vector.extract_strided_slice %410 {offsets = [0, 0], sizes = [2, 32], strides = [1, 1]} : vector<2x96xf32> to vector<2x32xf32>
    %415 = vector.extract_strided_slice %413 {offsets = [0, 0], sizes = [2, 32], strides = [1, 1]} : vector<2x96xf32> to vector<2x32xf32>
    %416 = arith.addf %414, %415 : vector<2x32xf32>
    %417 = arith.negf %416 : vector<2x32xf32>
    %418 = math.exp %417 : vector<2x32xf32>
    %cst_96 = arith.constant 1.000000e+00 : f32
    %419 = vector.broadcast %cst_96 : f32 to vector<2x32xf32>
    %420 = arith.addf %419, %418 : vector<2x32xf32>
    %421 = arith.divf %419, %420 : vector<2x32xf32>
    %422 = vector.extract_strided_slice %410 {offsets = [0, 32], sizes = [2, 32], strides = [1, 1]} : vector<2x96xf32> to vector<2x32xf32>
    %423 = vector.extract_strided_slice %413 {offsets = [0, 32], sizes = [2, 32], strides = [1, 1]} : vector<2x96xf32> to vector<2x32xf32>
    %424 = arith.addf %422, %423 : vector<2x32xf32>
    %425 = arith.negf %424 : vector<2x32xf32>
    %426 = math.exp %425 : vector<2x32xf32>
    %cst_97 = arith.constant 1.000000e+00 : f32
    %427 = vector.broadcast %cst_97 : f32 to vector<2x32xf32>
    %428 = arith.addf %427, %426 : vector<2x32xf32>
    %429 = arith.divf %427, %428 : vector<2x32xf32>
    %430 = vector.extract_strided_slice %410 {offsets = [0, 64], sizes = [2, 32], strides = [1, 1]} : vector<2x96xf32> to vector<2x32xf32>
    %431 = vector.extract_strided_slice %413 {offsets = [0, 64], sizes = [2, 32], strides = [1, 1]} : vector<2x96xf32> to vector<2x32xf32>
    %432 = arith.mulf %421, %431 : vector<2x32xf32>
    %433 = arith.addf %430, %432 : vector<2x32xf32>
    %434 = math.tanh %433 : vector<2x32xf32>
    %cst_98 = arith.constant 1.000000e+00 : f32
    %435 = vector.broadcast %cst_98 : f32 to vector<2x32xf32>
    %436 = arith.subf %435, %429 : vector<2x32xf32>
    %437 = arith.mulf %436, %434 : vector<2x32xf32>
    %438 = arith.mulf %429, %409 : vector<2x32xf32>
    %439 = arith.addf %437, %438 : vector<2x32xf32>
    %c0_99 = arith.constant 0 : index
    %c0_100 = arith.constant 0 : index
    %440 = vector.load %arg11[%c0_99, %c0_100] : memref<32x96xf32, #tpu.memory_space<vmem>>, vector<32x96xf32>
    %cst_101 = arith.constant dense<0.000000e+00> : vector<2x96xf32>
    %441 = tpu.matmul %439, %440, %cst_101 {dimension_numbers = #tpu.dot_dimension_numbers<[1], [0], [0], [1], [0, 0, 1, 1], [], []>} : vector<2x32xf32>, vector<32x96xf32>, vector<2x96xf32> -> vector<2x96xf32>
    %c0_102 = arith.constant 0 : index
    %c0_103 = arith.constant 0 : index
    %442 = vector.load %arg13[%c0_102, %c0_103] : memref<1x96xf32, #tpu.memory_space<vmem>>, vector<1x96xf32>
    %443 = vector.broadcast %442 : vector<1x96xf32> to vector<2x96xf32>
    %444 = arith.addf %441, %443 : vector<2x96xf32>
    %c0_104 = arith.constant 0 : index
    %c0_105 = arith.constant 0 : index
    %445 = vector.load %arg2[%c0_104, %c0_105] : memref<2x32xf32, #tpu.memory_space<vmem>>, vector<2x32xf32>
    %c0_106 = arith.constant 0 : index
    %c0_107 = arith.constant 0 : index
    %446 = vector.load %arg12[%c0_106, %c0_107] : memref<32x96xf32, #tpu.memory_space<vmem>>, vector<32x96xf32>
    %c0_108 = arith.constant 0 : index
    %c0_109 = arith.constant 0 : index
    %447 = vector.load %arg14[%c0_108, %c0_109] : memref<1x96xf32, #tpu.memory_space<vmem>>, vector<1x96xf32>
    %cst_110 = arith.constant dense<0.000000e+00> : vector<2x96xf32>
    %448 = tpu.matmul %445, %446, %cst_110 {dimension_numbers = #tpu.dot_dimension_numbers<[1], [0], [0], [1], [0, 0, 1, 1], [], []>} : vector<2x32xf32>, vector<32x96xf32>, vector<2x96xf32> -> vector<2x96xf32>
    %449 = vector.broadcast %447 : vector<1x96xf32> to vector<2x96xf32>
    %450 = arith.addf %448, %449 : vector<2x96xf32>
    %451 = vector.extract_strided_slice %444 {offsets = [0, 0], sizes = [2, 32], strides = [1, 1]} : vector<2x96xf32> to vector<2x32xf32>
    %452 = vector.extract_strided_slice %450 {offsets = [0, 0], sizes = [2, 32], strides = [1, 1]} : vector<2x96xf32> to vector<2x32xf32>
    %453 = arith.addf %451, %452 : vector<2x32xf32>
    %454 = arith.negf %453 : vector<2x32xf32>
    %455 = math.exp %454 : vector<2x32xf32>
    %cst_111 = arith.constant 1.000000e+00 : f32
    %456 = vector.broadcast %cst_111 : f32 to vector<2x32xf32>
    %457 = arith.addf %456, %455 : vector<2x32xf32>
    %458 = arith.divf %456, %457 : vector<2x32xf32>
    %459 = vector.extract_strided_slice %444 {offsets = [0, 32], sizes = [2, 32], strides = [1, 1]} : vector<2x96xf32> to vector<2x32xf32>
    %460 = vector.extract_strided_slice %450 {offsets = [0, 32], sizes = [2, 32], strides = [1, 1]} : vector<2x96xf32> to vector<2x32xf32>
    %461 = arith.addf %459, %460 : vector<2x32xf32>
    %462 = arith.negf %461 : vector<2x32xf32>
    %463 = math.exp %462 : vector<2x32xf32>
    %cst_112 = arith.constant 1.000000e+00 : f32
    %464 = vector.broadcast %cst_112 : f32 to vector<2x32xf32>
    %465 = arith.addf %464, %463 : vector<2x32xf32>
    %466 = arith.divf %464, %465 : vector<2x32xf32>
    %467 = vector.extract_strided_slice %444 {offsets = [0, 64], sizes = [2, 32], strides = [1, 1]} : vector<2x96xf32> to vector<2x32xf32>
    %468 = vector.extract_strided_slice %450 {offsets = [0, 64], sizes = [2, 32], strides = [1, 1]} : vector<2x96xf32> to vector<2x32xf32>
    %469 = arith.mulf %458, %468 : vector<2x32xf32>
    %470 = arith.addf %467, %469 : vector<2x32xf32>
    %471 = math.tanh %470 : vector<2x32xf32>
    %cst_113 = arith.constant 1.000000e+00 : f32
    %472 = vector.broadcast %cst_113 : f32 to vector<2x32xf32>
    %473 = arith.subf %472, %466 : vector<2x32xf32>
    %474 = arith.mulf %473, %471 : vector<2x32xf32>
    %475 = arith.mulf %466, %445 : vector<2x32xf32>
    %476 = arith.addf %474, %475 : vector<2x32xf32>
    %c0_114 = arith.constant 0 : index
    %c0_115 = arith.constant 0 : index
    %477 = vector.load %arg20[%c0_114, %c0_115] : memref<2x32xf32, #tpu.memory_space<vmem>>, vector<2x32xf32>
    tpu.vector_store %arg20[%c0_114, %c0_115], %476 {strides = array<i32>} : memref<2x32xf32, #tpu.memory_space<vmem>>, vector<2x32xf32>,
    %c0_116 = arith.constant 0 : index
    %c0_117 = arith.constant 0 : index
    %478 = vector.load %arg15[%c0_116, %c0_117] : memref<32x2xf32, #tpu.memory_space<vmem>>, vector<32x2xf32>
    %cst_118 = arith.constant dense<0.000000e+00> : vector<2x2xf32>
    %479 = tpu.matmul %476, %478, %cst_118 {dimension_numbers = #tpu.dot_dimension_numbers<[1], [0], [0], [1], [0, 0, 1, 1], [], []>} : vector<2x32xf32>, vector<32x2xf32>, vector<2x2xf32> -> vector<2x2xf32>
    %c0_119 = arith.constant 0 : index
    %c0_120 = arith.constant 0 : index
    %480 = vector.load %arg16[%c0_119, %c0_120] : memref<1x2xf32, #tpu.memory_space<vmem>>, vector<1x2xf32>
    %481 = vector.broadcast %480 : vector<1x2xf32> to vector<2x2xf32>
    %482 = arith.addf %479, %481 : vector<2x2xf32>
    %483 = vector.extract_strided_slice %482 {offsets = [0, 0], sizes = [2, 1], strides = [1, 1]} : vector<2x2xf32> to vector<2x1xf32>
    %c0_121 = arith.constant 0 : index
    %c0_122 = arith.constant 0 : index
    %484 = vector.load %arg19[%c0_121, %c0_122] : memref<2x1xf32, #tpu.memory_space<vmem>>, vector<2x1xf32>
    tpu.vector_store %arg19[%c0_121, %c0_122], %483 {strides = array<i32>} : memref<2x1xf32, #tpu.memory_space<vmem>>, vector<2x1xf32>,
    %485 = vector.extract_strided_slice %482 {offsets = [0, 1], sizes = [2, 1], strides = [1, 1]} : vector<2x2xf32> to vector<2x1xf32>
    %486 = vector.extract_strided_slice %379 {offsets = [0, 0], sizes = [4, 32], strides = [1, 1]} : vector<8x32xf32> to vector<4x32xf32>
    %c0_123 = arith.constant 0 : index
    %c0_124 = arith.constant 0 : index
    %c0_125 = arith.constant 0 : index
    %487 = vector.load %arg23[%c0_123, %c0_124, %c0_125] : memref<2x4x32xf32, #tpu.memory_space<vmem>>, vector<1x4x32xf32>
    %488 = vector.shape_cast %487 : vector<1x4x32xf32> to vector<4x32xf32>
    %489 = vector.shape_cast %486 : vector<4x32xf32> to vector<1x4x32xf32>
    tpu.vector_store %arg23[%c0_123, %c0_124, %c0_125], %489 {strides = array<i32>} : memref<2x4x32xf32, #tpu.memory_space<vmem>>, vector<1x4x32xf32>,
    %490 = vector.extract_strided_slice %379 {offsets = [4, 0], sizes = [4, 32], strides = [1, 1]} : vector<8x32xf32> to vector<4x32xf32>
    %c1 = arith.constant 1 : index
    %c0_126 = arith.constant 0 : index
    %c0_127 = arith.constant 0 : index
    %491 = vector.load %arg23[%c1, %c0_126, %c0_127] : memref<2x4x32xf32, #tpu.memory_space<vmem>>, vector<1x4x32xf32>
    %492 = vector.shape_cast %491 : vector<1x4x32xf32> to vector<4x32xf32>
    %493 = vector.shape_cast %490 : vector<4x32xf32> to vector<1x4x32xf32>
    tpu.vector_store %arg23[%c1, %c0_126, %c0_127], %493 {strides = array<i32>} : memref<2x4x32xf32, #tpu.memory_space<vmem>>, vector<1x4x32xf32>,
    %c0_128 = arith.constant 0 : index
    %c0_129 = arith.constant 0 : index
    %c0_130 = arith.constant 0 : index
    %494 = vector.load %arg23[%c0_128, %c0_129, %c0_130] : memref<2x4x32xf32, #tpu.memory_space<vmem>>, vector<2x4x32xf32>
    %c0_131 = arith.constant 0 : index
    %c0_132 = arith.constant 0 : index
    %495 = vector.load %arg17[%c0_131, %c0_132] : memref<1x32xf32, #tpu.memory_space<vmem>>, vector<1x32xf32>
    %496 = vector.shape_cast %495 : vector<1x32xf32> to vector<1x1x32xf32>
    %497 = vector.broadcast %496 : vector<1x1x32xf32> to vector<2x4x32xf32>
    %498 = arith.mulf %494, %497 : vector<2x4x32xf32>
    %cst_133 = arith.constant dense<0.000000e+00> : vector<2x4xf32>
    %499 = vector.multi_reduction <add>, %498, %cst_133 [2] : vector<2x4x32xf32> to vector<2x4xf32>
    %500 = vector.broadcast %485 : vector<2x1xf32> to vector<2x4xf32>
    %501 = arith.addf %500, %499 : vector<2x4xf32>
    %cst_134 = arith.constant 0.000000e+00 : f32
    %502 = vector.broadcast %cst_134 : f32 to vector<2x4xf32>
    %503 = arith.maximumf %501, %502 : vector<2x4xf32>
    %c0_135 = arith.constant 0 : index
    %c0_136 = arith.constant 0 : index
    %504 = vector.load %arg18[%c0_135, %c0_136] : memref<2x4xf32, #tpu.memory_space<vmem>>, vector<2x4xf32>
    tpu.vector_store %arg18[%c0_135, %c0_136], %503 {strides = array<i32>} : memref<2x4xf32, #tpu.memory_space<vmem>>, vector<2x4xf32>,
    return
  }
}

</mosaic_0001>

<bundles_post_ra>
// kernel: command_scorer_forward.1
= control target key start
LH: loop header
LB: loop body
LE: loop exit
PB: predicated region body
PF: predicated region fallthrough
CT: control target
= control target key end

     0   :  { %s1981_s0 = inlined_call_operand.vmem [shape: f32[16,32], index: 0, kind: input, shape index: {}]   ;;  %s1982_s1 = inlined_call_operand.vmem [shape: f32[48,32], index: 1, kind: input, shape index: {}]   ;;  %s1983_s2 = inlined_call_operand.vmem [shape: f32[2,32], index: 2, kind: input, shape index: {}]   ;;  %s1984_s3 = inlined_call_operand.vmem [shape: f32[32,96], index: 3, kind: input, shape index: {}]   ;;  %s1985_s4 = inlined_call_operand.vmem [shape: f32[32,96], index: 4, kind: input, shape index: {}]   ;;  %s1986_s5 = inlined_call_operand.vmem [shape: f32[1,96], index: 5, kind: input, shape index: {}]   ;;  %s1987_s6 = inlined_call_operand.vmem [shape: f32[1,96], index: 6, kind: input, shape index: {}]   ;;  %s1988_s7 = inlined_call_operand.vmem [shape: f32[32,96], index: 7, kind: input, shape index: {}]   ;;  %s1989_s8 = inlined_call_operand.vmem [shape: f32[32,96], index: 8, kind: input, shape index: {}]   ;;  %s1990_s9 = inlined_call_operand.vmem [shape: f32[1,96], index: 9, kind: input, shape index: {}]   ;;  %s1991_s10 = inlined_call_operand.vmem [shape: f32[1,96], index: 10, kind: input, shape index: {}]   ;;  %s1992_s11 = inlined_call_operand.vmem [shape: f32[32,96], index: 11, kind: input, shape index: {}]   ;;  %s1993_s12 = inlined_call_operand.vmem [shape: f32[32,96], index: 12, kind: input, shape index: {}]   ;;  %s1994_s13 = inlined_call_operand.vmem [shape: f32[1,96], index: 13, kind: input, shape index: {}]   ;;  %s1995_s14 = inlined_call_operand.vmem [shape: f32[1,96], index: 14, kind: input, shape index: {}]   ;;  %s1996_s15 = inlined_call_operand.vmem [shape: f32[32,2], index: 15, kind: input, shape index: {}]   ;;  %s1997_s16 = inlined_call_operand.vmem [shape: f32[1,2], index: 16, kind: input, shape index: {}]   ;;  %s1998_s17 = inlined_call_operand.vmem [shape: f32[1,32], index: 17, kind: input, shape index: {}]   ;;  %s1999_s18 = inlined_call_operand.vmem [shape: f32[2,4], index: 18, kind: output, shape index: {0}]   ;;  %s2000_s19 = inlined_call_operand.vmem [shape: f32[2,1], index: 19, kind: output, shape index: {1}]   ;;  %s2001_s20 = inlined_call_operand.hbm [shape: f32[2,32], index: 20, kind: output, shape index: {2}]  }
   0x1   :  { %2007 = sst [smem:[#allocation8_spill]] %s1981_s0 }
   0x2   :  { %2008 = sst [smem:[#allocation9_spill]] %s1982_s1 }
   0x3   :  { %2009 = sst [smem:[#allocation10_spill]] %s1983_s2 }
   0x4   :  { %2010 = sst [smem:[#allocation11_spill]] %s1984_s3 }
   0x5   :  { %2011 = sst [smem:[#allocation12_spill]] %s1985_s4 }
   0x6   :  { %2012 = sst [smem:[#allocation13_spill]] %s1996_s15 }
   0x7   :  { %s2013_s23 = sld [smem:[#allocation11_spill]]  ;;  %vm73_vm0 = vcmask 261120  }
   0x8   :  { %s2014_s15 = sld [smem:[#allocation12_spill]] }
   0x9   :  { %s2015_s25 = sld [smem:[#allocation8_spill]] }
   0xd   :  { %v68_v0 = vld [vmem:[%s2013_s23 + $0x18] sm:$0xff]  ;;  %v67_v2 = vld [vmem:[%s2013_s23 + $0x10] sm:$0xff]  ;;  %v66_v4 = vld [vmem:[%s2013_s23 + $0x8] sm:$0xff] }
   0xe   :  { %v1596_v1 = vld [vmem:[%s2014_s15 + $0x18] sm:$0xff]  ;;  %92 = vmatpush.msra.mxu0 %v68_v0  ;;  %v1605_v3 = vld [vmem:[%s2014_s15 + $0x10] sm:$0xff]  ;;  %v1613_v5 = vld [vmem:[%s2014_s15 + $0x8] sm:$0xff] }
   0xf   :  { %208 = vmatpush.msra.mxu2 %v1596_v1  ;;  %v65_v6 = vld [vmem:[%s2013_s23] sm:$0xff] }
  0x10   :  { %v1621_v7 = vld [vmem:[%s2014_s15] sm:$0xff]  ;;  %93 = vmatpush.msra.mxu0 %v67_v2 }
  0x11   :  { %209 = vmatpush.msra.mxu2 %v1605_v3  ;;  %v63_v8 = vld [vmem:[%s2015_s25] sm:$0xff] }
  0x12   :  { %94 = vmatpush.msra.mxu0 %v66_v4 }
  0x13   :  { %210 = vmatpush.msra.mxu2 %v1613_v5 }
  0x14   :  { %26 = vsyncpa [#allocation6], 0  ;;  %95 = vmatpush.msra.mxu0 %v65_v6  ;;  %v1479_v9 = vmov 0.0   ;;  %v1642_v10 = vld [vmem:[%s1986_s5] ss:$0 sm:$0xff]  ;;  %vm103_vm1 = vcmask 785408  }
  0x15   :  { %211 = vmatpush.msra.mxu2 %v1621_v7  ;;  %1308 = vmatmul.msk.f32.vlgmr.msra.gmra.mxu0 %vm73_vm0, %v63_v8  ;;  %v1649_v13 = vld [vmem:[%s1987_s6] ss:$0 sm:$0xff]  ;;  %s1480_s27 = smov 64   ;;  %s1481_s5 = smov 96   ;;  %v1669_v61 = vld [vmem:[%s1989_s8 + $0x18] sm:$0xff]  ;;  %v1674_v62 = vld [vmem:[%s1989_s8 + $0x10] sm:$0xff] }
  0x16   :  { %212 = vmatmul.f32.vlgmr.msra.gmra.mxu2 %v1479_v9  ;;  %466 = vmatpush.msrb.mxu0 %v1596_v1  ;;  %v115_v63 = vld [vmem:[%s1988_s7 + $0x18] sm:$0xff]  ;;  %v114_v0 = vld [vmem:[%s1988_s7 + $0x10] sm:$0xff]  ;;  %v1687_v2 = vld [vmem:[%s1989_s8 + $0x8] sm:$0xff]  ;;  %s2016_s0 = sld [smem:[#allocation9_spill]] }
  0x17   :  { %336 = vmatpush.msrb.mxu2 %v1596_v1  ;;  %271 = vmatpush.msra.mxu3 %v1669_v61  ;;  %v113_v4 = vld [vmem:[%s1988_s7 + $0x8] sm:$0xff]  ;;  %v1698_v6 = vld [vmem:[%s1989_s8] sm:$0xff]  ;;  %s2017_s15 = sld [smem:[#allocation10_spill]]  ;;  %s1482_s8 = smov 32  }
  0x18   :  { %467 = vmatpush.msrb.mxu0 %v1605_v3  ;;  %150 = vmatpush.msra.mxu1 %v115_v63  ;;  %v112_v8 = vld [vmem:[%s1988_s7] sm:$0xff]  ;;  %s2018_s1 = sld [smem:[#allocation13_spill]] }
  0x19   :  { %337 = vmatpush.msrb.mxu2 %v1605_v3  ;;  %272 = vmatpush.msra.mxu3 %v1674_v62 }
  0x1a   :  { %468 = vmatpush.msrb.mxu0 %v1613_v5  ;;  %151 = vmatpush.msra.mxu1 %v114_v0 }
  0x1b   :  { %338 = vmatpush.msrb.mxu2 %v1613_v5  ;;  %273 = vmatpush.msra.mxu3 %v1687_v2 }
  0x1c   :  { %469 = vmatpush.msrb.mxu0 %v1621_v7  ;;  %152 = vmatpush.msra.mxu1 %v113_v4 }
  0x1d   :  { %339 = vmatpush.msrb.mxu2 %v1621_v7  ;;  %274 = vmatpush.msra.mxu3 %v1698_v6 }
  0x1e   :  { %661 = vmatpush.msra.mxu0 %v1669_v61  ;;  %275 = vmatmul.f32.vlgmr.msra.gmra.mxu3 %v1479_v9 }
  0x1f   :  { %531 = vmatpush.msra.mxu2 %v1669_v61  ;;  %153 = vmatpush.msra.mxu1 %v112_v8 }
  0x20   :  { %662 = vmatpush.msra.mxu0 %v1674_v62  ;;  %401 = vmatpush.msrb.mxu3 %v1669_v61 }
  0x21   :  { %532 = vmatpush.msra.mxu2 %v1674_v62 }
  0x22   :  { %663 = vmatpush.msra.mxu0 %v1687_v2  ;;  %402 = vmatpush.msrb.mxu3 %v1674_v62 }
  0x23   :  { %533 = vmatpush.msra.mxu2 %v1687_v2 }
  0x24   :  { %664 = vmatpush.msra.mxu0 %v1698_v6  ;;  %403 = vmatpush.msrb.mxu3 %v1687_v2 }
  0x25   :  { %534 = vmatpush.msra.mxu2 %v1698_v6 }
  0x26   :  { %404 = vmatpush.msrb.mxu3 %v1698_v6 }
  0x28   :  { %596 = vmatpush.msra.mxu3 %v1596_v1 }
  0x2a   :  { %597 = vmatpush.msra.mxu3 %v1605_v3 }
  0x2c   :  { %598 = vmatpush.msra.mxu3 %v1613_v5 }
  0x2e   :  { %599 = vmatpush.msra.mxu3 %v1621_v7 }
  0x92   :  { %v97_v11 = vpop.f32.mrf.mxu0 }
  0x93   :  { %v98_v12 = vadd.f32 %v1642_v10, %v97_v11  ;;  %v106_v11 = vld [vmem:[%s2016_s0] sm:$0xff] }
  0x94   :  { %1310 = vmatmul.msk.f32.vlgmr.msra.gmra.mxu1 %vm73_vm0, %v106_v11 }
  0x95   :  { %104 = vst.msk [vmem:[#allocation2] sm:$0xff] %vm103_vm1, %v98_v12 }
  0x99   :  { %v213_v14 = vpop.f32.mrf.mxu2 }
  0x9a   :  { %v214_v15 = vadd.f32 %v1649_v13, %v213_v14 }
  0x9c   :  { %237 = vrot.lane.b32.xlu0 %v214_v15, %s1480_s27  ;;  %v189_v16 = vld [vmem:[#allocation2] sm:$0x3]  ;;  %v1662_v44 = vld [vmem:[#allocation2 + $0x2] sm:$0x3] }
  0x9d   :  { %v216_v17 = vadd.f32 %v214_v15, %v189_v16  ;;  %v64_v15 = vld [vmem:[%s2015_s25 + $0x8] sm:$0xff] }
  0x9e   :  { %1309 = vmatmul.msk.f32.gmra.mxu0 %vm73_vm0, %v64_v15 }
  0x9f   :  { %v1316_v18 = vmul.f32 -1.442695, %v216_v17 }
  0xa1   :  { %1361 = vpow2.f32 %v1316_v18 }
  0xa7   :  { %v1362_v19 = vpop.eup %1361 }
  0xa8   :  { %v220_v20 = vadd.f32 1.0, %v1362_v19  ;;  %v1742_v19 = vld [vmem:[%s1991_s10] ss:$0 sm:$0xff] }
  0xaa   :  { %1363 = vrcp.f32 %v220_v20  ;;  %v232_v26 = vand.u32 2147483648, %v220_v20  ;;  %vm226_vm3 = vweird.f32 %v220_v20  ;;  %v230_v27 = vand.u32 2147483647, %v220_v20 }
  0xac   :  { %v233_v29 = vor.u32 1.1754944e-38, %v232_v26  ;;  %vm231_vm5 = vcmp.eq.f32.partialorder %v230_v27, 8.507059e+37 }
  0xb0   :  { %v1364_v21 = vpop.eup %1363 }
  0xb1   :  { %v222_v22 = vmul.f32 %v1364_v21, %v220_v20  ;;  %vm227_vm2 = vweird.f32 %v1364_v21  ;;  %v276_v20 = vpop.f32.mrf.mxu3 }
  0xb2   :  { %vm228_vm4 = vmor %vm226_vm3, %vm227_vm2 }
  0xb3   :  { %v223_v23 = vsub.f32 1.0, %v222_v22 }
  0xb5   :  { %v224_v24 = vmul.f32 %v1364_v21, %v223_v23 }
  0xb7   :  { %v225_v25 = vadd.f32 %v1364_v21, %v224_v24 }
  0xb9   :  { %v229_v28 = vsel %vm228_vm4, %v1364_v21, %v225_v25  ;;  %v277_v21 = vadd.f32 %v1742_v19, %v276_v20 }
  0xba   :  { %v234_v31 = vsel %vm231_vm5, %v233_v29, %v229_v28 }
  0xbb   :  { %v247_v36 = vsub.f32 1.0, %v234_v31  ;;  %v253_v38 = vmul.f32 0.0, %v234_v31 }
 0x10e   :  { %v238_v30 = vpop.permute.xlu0 %237 }
 0x10f   :  { %v240_v32 = vmul.f32 %v238_v30, %v234_v31 }
 0x111   :  { %242 = vrot.lane.b32.xlu0 %v240_v32, %s1480_s27  ;;  %v155_v17 = vpop.f32.mrf.mxu1 }
 0x183   :  { %v243_v33 = vpop.permute.xlu0 %242 }
 0x184   :  { %v245_v34 = vadd.f32 %v243_v33, %v189_v16  ;;  %v1736_v16 = vld [vmem:[%s1990_s9] ss:$0 sm:$0xff] }
 0x185   :  { %v156_v18 = vadd.f32 %v1736_v16, %v155_v17 }
 0x186   :  { %1365 = vtanh.f32 %v245_v34 }
 0x187   :  { %173 = vst.msk [vmem:[#allocation3] sm:$0xff] %vm103_vm1, %v156_v18 }
 0x18c   :  { %v1366_v35 = vpop.eup %1365 }
 0x18d   :  { %249 = vrot.lane.b32.xlu1 %v1366_v35, %s1481_s5 }
 0x18e   :  { %v255_v27 = vld [vmem:[#allocation3] sm:$0xff] }
 0x18f   :  { %v279_v28 = vadd.f32 %v277_v21, %v255_v27 }
 0x191   :  { %v1317_v29 = vmul.f32 -1.442695, %v279_v28 }
 0x1ff   :  { %v250_v37 = vpop.permute.xlu1 %249 }
 0x200   :  { %v252_v39 = vmul.f32 %v250_v37, %v247_v36 }
 0x202   :  { %v1655_v40 = vadd.f32 %v253_v38, %v252_v39 }
 0x204   :  { %320 = vrot.lane.b32.xlu1 %v1655_v40, %s1481_s5 }
 0x276   :  { %v321_v41 = vpop.permute.xlu1 %320 }
 0x277   :  { %1318 = vmatmul.msk.f32.vlgmr.msrb.gmra.mxu2 %vm73_vm0, %v321_v41 }
 0x278   :  { %726 = vmatpush.msrb.mxu2 %v1596_v1 }
 0x27a   :  { %727 = vmatpush.msrb.mxu2 %v1605_v3 }
 0x27c   :  { %728 = vmatpush.msrb.mxu2 %v1613_v5 }
 0x27e   :  { %729 = vmatpush.msrb.mxu2 %v1621_v7 }
 0x2fa   :  { %v341_v42 = vpop.f32.mrf.mxu2 }
 0x2fb   :  { %v342_v43 = vadd.f32 %v1649_v13, %v341_v42 }
 0x2fd   :  { %365 = vrot.lane.b32.xlu2 %v342_v43, %s1480_s27  ;;  %v344_v45 = vadd.f32 %v342_v43, %v1662_v44 }
 0x2ff   :  { %v1319_v46 = vmul.f32 -1.442695, %v344_v45 }
 0x301   :  { %1367 = vpow2.f32 %v1319_v46 }
 0x307   :  { %v1368_v47 = vpop.eup %1367 }
 0x308   :  { %v348_v48 = vadd.f32 1.0, %v1368_v47 }
 0x30a   :  { %1369 = vrcp.f32 %v348_v48  ;;  %v360_v54 = vand.u32 2147483648, %v348_v48  ;;  %vm354_vm7 = vweird.f32 %v348_v48  ;;  %v358_v55 = vand.u32 2147483647, %v348_v48 }
 0x30c   :  { %v361_v57 = vor.u32 1.1754944e-38, %v360_v54  ;;  %vm359_vm9 = vcmp.eq.f32.partialorder %v358_v55, 8.507059e+37 }
 0x310   :  { %v1370_v49 = vpop.eup %1369 }
 0x311   :  { %v350_v50 = vmul.f32 %v1370_v49, %v348_v48  ;;  %vm355_vm6 = vweird.f32 %v1370_v49 }
 0x312   :  { %vm356_vm8 = vmor %vm354_vm7, %vm355_vm6 }
 0x313   :  { %v351_v51 = vsub.f32 1.0, %v350_v50 }
 0x315   :  { %v352_v52 = vmul.f32 %v1370_v49, %v351_v51  ;;  %v448_v51 = vld [vmem:[#allocation2 + $0x4] sm:$0x3] }
 0x317   :  { %v353_v53 = vadd.f32 %v1370_v49, %v352_v52 }
 0x319   :  { %v357_v56 = vsel %vm356_vm8, %v1370_v49, %v353_v53 }
 0x31a   :  { %v362_v59 = vsel %vm359_vm9, %v361_v57, %v357_v56 }
 0x31b   :  { %v375_v22 = vsub.f32 1.0, %v362_v59  ;;  %v381_v24 = vmul.f32 %v362_v59, %v1655_v40 }
 0x357   :  { %v366_v58 = vpop.permute.xlu2 %365 }
 0x358   :  { %v368_v60 = vmul.f32 %v366_v58, %v362_v59 }
 0x35a   :  { %370 = vrot.lane.b32.xlu2 %v368_v60, %s1480_s27 }
 0x362   :  { %300 = vrot.lane.b32.xlu2 %v277_v21, %s1480_s27  ;;  %v107_v21 = vld [vmem:[%s2016_s0 + $0x8] sm:$0xff] }
 0x363   :  { %1311 = vmatmul.msk.f32.gmra.mxu1 %vm73_vm0, %v107_v21 }
 0x3b4   :  { %v371_v9 = vpop.permute.xlu2 %370 }
 0x3b5   :  { %v373_v12 = vadd.f32 %v371_v9, %v1662_v44  ;;  %v100_v44 = vpop.f32.mrf.mxu0 }
 0x3b6   :  { %v101_v45 = vadd.f32 %v1642_v10, %v100_v44 }
 0x3b7   :  { %1371 = vtanh.f32 %v373_v12 }
 0x3b8   :  { %1373 = vpow2.f32 %v1317_v29  ;;  %105 = vst.msk [vmem:[#allocation2 + $0x8] sm:$0xff] %vm103_vm1, %v101_v45 }
 0x3bc   :  { %v301_v40 = vpop.permute.xlu2 %300 }
 0x3bd   :  { %v1372_v14 = vpop.eup %1371 }
 0x3be   :  { %377 = vrot.lane.b32.xlu0 %v1372_v14, %s1481_s5  ;;  %v1374_v30 = vpop.eup %1373 }
 0x3bf   :  { %v283_v31 = vadd.f32 1.0, %v1374_v30 }
 0x3c1   :  { %1375 = vrcp.f32 %v283_v31  ;;  %v295_v34 = vand.u32 2147483648, %v283_v31  ;;  %vm289_vm10 = vweird.f32 %v283_v31  ;;  %v293_v36 = vand.u32 2147483647, %v283_v31 }
 0x3c3   :  { %v296_v38 = vor.u32 1.1754944e-38, %v295_v34  ;;  %vm294_vm13 = vcmp.eq.f32.partialorder %v293_v36, 8.507059e+37 }
 0x3c7   :  { %v1376_v32 = vpop.eup %1375 }
 0x3c8   :  { %v285_v33 = vmul.f32 %v1376_v32, %v283_v31  ;;  %vm290_vm11 = vweird.f32 %v1376_v32 }
 0x3c9   :  { %vm291_vm12 = vmor %vm289_vm10, %vm290_vm11 }
 0x3ca   :  { %v286_v35 = vsub.f32 1.0, %v285_v33 }
 0x3cc   :  { %v287_v37 = vmul.f32 %v1376_v32, %v286_v35 }
 0x3ce   :  { %v288_v39 = vadd.f32 %v1376_v32, %v287_v37 }
 0x3d0   :  { %v292_v41 = vsel %vm291_vm12, %v1376_v32, %v288_v39 }
 0x3d1   :  { %v297_v42 = vsel %vm294_vm13, %v296_v38, %v292_v41 }
 0x3d2   :  { %v303_v43 = vmul.f32 %v301_v40, %v297_v42  ;;  %v310_v14 = vsub.f32 1.0, %v297_v42  ;;  %v316_v17 = vmul.f32 0.0, %v297_v42 }
 0x430   :  { %v378_v23 = vpop.permute.xlu0 %377 }
 0x431   :  { %v380_v25 = vmul.f32 %v378_v23, %v375_v22 }
 0x433   :  { %v1748_v26 = vadd.f32 %v381_v24, %v380_v25 }
 0x435   :  { %450 = vrot.lane.b32.xlu1 %v1748_v26, %s1481_s5 }
 0x43d   :  { %305 = vrot.lane.b32.xlu1 %v303_v43, %s1480_s27 }
 0x4a7   :  { %v451_v46 = vpop.permute.xlu1 %450 }
 0x4a8   :  { %1322 = vmatmul.msk.f32.vlgmr.msrb.gmra.mxu0 %vm73_vm0, %v451_v46 }
 0x4a9   :  { %856 = vmatpush.msrb.mxu0 %v1596_v1 }
 0x4ab   :  { %857 = vmatpush.msrb.mxu0 %v1605_v3 }
 0x4ad   :  { %858 = vmatpush.msrb.mxu0 %v1613_v5 }
 0x4af   :  { %859 = vmatpush.msrb.mxu0 %v1621_v7  ;;  %v306_v47 = vpop.permute.xlu1 %305 }
 0x4b0   :  { %v308_v48 = vadd.f32 %v306_v47, %v255_v27  ;;  %v158_v27 = vpop.f32.mrf.mxu1 }
 0x4b1   :  { %v159_v28 = vadd.f32 %v1736_v16, %v158_v27 }
 0x4b2   :  { %1377 = vtanh.f32 %v308_v48 }
 0x4b3   :  { %174 = vst.msk [vmem:[#allocation3 + $0x8] sm:$0xff] %vm103_vm1, %v159_v28 }
 0x4b8   :  { %v1378_v10 = vpop.eup %1377 }
 0x4ba   :  { %v383_v36 = vld [vmem:[#allocation3 + $0x8] sm:$0xff] }
 0x525   :  { %v471_v49 = vpop.f32.mrf.mxu0 }
 0x526   :  { %v472_v50 = vadd.f32 %v1649_v13, %v471_v49 }
 0x528   :  { %495 = vrot.lane.b32.xlu0 %v472_v50, %s1480_s27  ;;  %v474_v52 = vadd.f32 %v472_v50, %v448_v51 }
 0x52a   :  { %v1323_v53 = vmul.f32 -1.442695, %v474_v52 }
 0x52c   :  { %1379 = vpow2.f32 %v1323_v53 }
 0x530   :  { %312 = vrot.lane.b32.xlu0 %v1378_v10, %s1481_s5 }
 0x532   :  { %v1380_v54 = vpop.eup %1379 }
 0x533   :  { %v478_v55 = vadd.f32 1.0, %v1380_v54 }
 0x535   :  { %1381 = vrcp.f32 %v478_v55  ;;  %v490_v63 = vand.u32 2147483648, %v478_v55  ;;  %vm484_vm15 = vweird.f32 %v478_v55  ;;  %v488_v0 = vand.u32 2147483647, %v478_v55 }
 0x537   :  { %v491_v8 = vor.u32 1.1754944e-38, %v490_v63  ;;  %vm489_vm3 = vcmp.eq.f32.partialorder %v488_v0, 8.507059e+37 }
 0x53b   :  { %v1382_v56 = vpop.eup %1381 }
 0x53c   :  { %v480_v57 = vmul.f32 %v1382_v56, %v478_v55  ;;  %vm485_vm14 = vweird.f32 %v1382_v56 }
 0x53d   :  { %vm486_vm2 = vmor %vm484_vm15, %vm485_vm14 }
 0x53e   :  { %v481_v58 = vsub.f32 1.0, %v480_v57  ;;  %v578_v57 = vld [vmem:[#allocation2 + $0x6] sm:$0x3] }
 0x540   :  { %v482_v59 = vmul.f32 %v1382_v56, %v481_v58 }
 0x542   :  { %v483_v60 = vadd.f32 %v1382_v56, %v482_v59 }
 0x544   :  { %v487_v4 = vsel %vm486_vm2, %v1382_v56, %v483_v60 }
 0x545   :  { %v492_v9 = vsel %vm489_vm3, %v491_v8, %v487_v4 }
 0x546   :  { %v505_v29 = vsub.f32 1.0, %v492_v9  ;;  %v511_v31 = vmul.f32 %v492_v9, %v1748_v26 }
 0x59a   :  { %v496_v11 = vpop.permute.xlu0 %495 }
 0x59b   :  { %v498_v12 = vmul.f32 %v496_v11, %v492_v9 }
 0x59d   :  { %500 = vrot.lane.b32.xlu2 %v498_v12, %s1480_s27 }
 0x5a2   :  { %v313_v15 = vpop.permute.xlu0 %312 }
 0x5a3   :  { %v315_v18 = vmul.f32 %v313_v15, %v310_v14 }
 0x5a5   :  { %v1764_v20 = vadd.f32 %v316_v17, %v315_v18 }
 0x5a7   :  { %385 = vrot.lane.b32.xlu2 %v1764_v20, %s1481_s5 }
 0x5f7   :  { %v501_v22 = vpop.permute.xlu2 %500 }
 0x5f8   :  { %v503_v23 = vadd.f32 %v501_v22, %v448_v51 }
 0x5fa   :  { %1383 = vtanh.f32 %v503_v23 }
 0x600   :  { %v1384_v24 = vpop.eup %1383 }
 0x601   :  { %507 = vrot.lane.b32.xlu1 %v1384_v24, %s1481_s5  ;;  %v386_v25 = vpop.permute.xlu2 %385 }
 0x602   :  { %1320 = vmatmul.msk.f32.vlgmr.msrb.gmra.mxu3 %vm73_vm0, %v386_v25 }
 0x603   :  { %791 = vmatpush.msrb.mxu3 %v1669_v61 }
 0x605   :  { %792 = vmatpush.msrb.mxu3 %v1674_v62 }
 0x607   :  { %793 = vmatpush.msrb.mxu3 %v1687_v2 }
 0x609   :  { %794 = vmatpush.msrb.mxu3 %v1698_v6 }
 0x673   :  { %v508_v30 = vpop.permute.xlu1 %507 }
 0x674   :  { %v510_v32 = vmul.f32 %v508_v30, %v505_v29  ;;  %v108_v29 = vld [vmem:[%s2016_s0 + $0x10] sm:$0xff] }
 0x675   :  { %1312 = vmatmul.msk.f32.gmra.mxu1 %vm73_vm0, %v108_v29 }
 0x676   :  { %v1781_v33 = vadd.f32 %v511_v31, %v510_v32 }
 0x678   :  { %580 = vrot.lane.b32.xlu0 %v1781_v33, %s1481_s5 }
 0x685   :  { %v406_v34 = vpop.f32.mrf.mxu3 }
 0x686   :  { %v407_v35 = vadd.f32 %v1742_v19, %v406_v34 }
 0x688   :  { %430 = vrot.lane.b32.xlu1 %v407_v35, %s1480_s27  ;;  %v409_v37 = vadd.f32 %v407_v35, %v383_v36 }
 0x68a   :  { %v1321_v38 = vmul.f32 -1.442695, %v409_v37 }
 0x68c   :  { %1385 = vpow2.f32 %v1321_v38 }
 0x692   :  { %v1386_v39 = vpop.eup %1385 }
 0x693   :  { %v413_v40 = vadd.f32 1.0, %v1386_v39 }
 0x695   :  { %1387 = vrcp.f32 %v413_v40  ;;  %v425_v46 = vand.u32 2147483648, %v413_v40  ;;  %vm419_vm5 = vweird.f32 %v413_v40  ;;  %v423_v47 = vand.u32 2147483647, %v413_v40 }
 0x697   :  { %v426_v49 = vor.u32 1.1754944e-38, %v425_v46  ;;  %vm424_vm7 = vcmp.eq.f32.partialorder %v423_v47, 8.507059e+37 }
 0x69b   :  { %v1388_v41 = vpop.eup %1387 }
 0x69c   :  { %v415_v26 = vmul.f32 %v1388_v41, %v413_v40  ;;  %vm420_vm4 = vweird.f32 %v1388_v41 }
 0x69d   :  { %vm421_vm6 = vmor %vm419_vm5, %vm420_vm4 }
 0x69e   :  { %v416_v43 = vsub.f32 1.0, %v415_v26 }
 0x6a0   :  { %v417_v44 = vmul.f32 %v1388_v41, %v416_v43 }
 0x6a2   :  { %v418_v45 = vadd.f32 %v1388_v41, %v417_v44 }
 0x6a4   :  { %v422_v48 = vsel %vm421_vm6, %v1388_v41, %v418_v45 }
 0x6a5   :  { %v427_v10 = vsel %vm424_vm7, %v426_v49, %v422_v48 }
 0x6a6   :  { %v440_v23 = vsub.f32 1.0, %v427_v10  ;;  %v446_v25 = vmul.f32 %v427_v10, %v1764_v20 }
 0x6ea   :  { %v581_v42 = vpop.permute.xlu0 %580 }
 0x6eb   :  { %1326 = vmatmul.msk.f32.vlgmr.msra.gmra.mxu3 %vm73_vm0, %v581_v42 }
 0x6ec   :  { %986 = vmatpush.msra.mxu3 %v1596_v1 }
 0x6ee   :  { %987 = vmatpush.msra.mxu3 %v1605_v3 }
 0x6f0   :  { %988 = vmatpush.msra.mxu3 %v1613_v5 }
 0x6f2   :  { %989 = vmatpush.msra.mxu3 %v1621_v7  ;;  %v161_v20 = vpop.f32.mrf.mxu1 }
 0x6f3   :  { %v162_v35 = vadd.f32 %v1736_v16, %v161_v20 }
 0x6f5   :  { %175 = vst.msk [vmem:[#allocation3 + $0x10] sm:$0xff] %vm103_vm1, %v162_v35 }
 0x6fa   :  { %v431_v50 = vpop.permute.xlu1 %430 }
 0x6fb   :  { %v433_v51 = vmul.f32 %v431_v50, %v427_v10 }
 0x6fd   :  { %435 = vrot.lane.b32.xlu0 %v433_v51, %s1480_s27 }
 0x76e   :  { %v601_v52 = vpop.f32.mrf.mxu3 }
 0x76f   :  { %v602_v53 = vadd.f32 %v1649_v13, %v601_v52  ;;  %v436_v54 = vpop.permute.xlu0 %435 }
 0x770   :  { %v438_v55 = vadd.f32 %v436_v54, %v383_v36 }
 0x771   :  { %625 = vrot.lane.b32.xlu2 %v602_v53, %s1480_s27  ;;  %v604_v58 = vadd.f32 %v602_v53, %v578_v57 }
 0x772   :  { %1389 = vtanh.f32 %v438_v55 }
 0x773   :  { %v1327_v59 = vmul.f32 -1.442695, %v604_v58 }
 0x775   :  { %1391 = vpow2.f32 %v1327_v59  ;;  %v708_v59 = vld [vmem:[#allocation2 + $0x8] sm:$0x3] }
 0x778   :  { %v1390_v56 = vpop.eup %1389 }
 0x779   :  { %442 = vrot.lane.b32.xlu2 %v1390_v56, %s1481_s5 }
 0x77b   :  { %v1392_v60 = vpop.eup %1391 }
 0x77c   :  { %v608_v63 = vadd.f32 1.0, %v1392_v60 }
 0x77e   :  { %1393 = vrcp.f32 %v608_v63  ;;  %v620_v12 = vand.u32 2147483648, %v608_v63  ;;  %vm614_vm9 = vweird.f32 %v608_v63  ;;  %v618_v14 = vand.u32 2147483647, %v608_v63 }
 0x780   :  { %v621_v17 = vor.u32 1.1754944e-38, %v620_v12  ;;  %vm619_vm11 = vcmp.eq.f32.partialorder %v618_v14, 8.507059e+37 }
 0x784   :  { %v1394_v0 = vpop.eup %1393 }
 0x785   :  { %v610_v4 = vmul.f32 %v1394_v0, %v608_v63  ;;  %vm615_vm8 = vweird.f32 %v1394_v0 }
 0x786   :  { %vm616_vm10 = vmor %vm614_vm9, %vm615_vm8 }
 0x787   :  { %v611_v8 = vsub.f32 1.0, %v610_v4 }
 0x789   :  { %v612_v11 = vmul.f32 %v1394_v0, %v611_v8 }
 0x78b   :  { %v613_v9 = vadd.f32 %v1394_v0, %v612_v11 }
 0x78d   :  { %v617_v15 = vsel %vm616_vm10, %v1394_v0, %v613_v9 }
 0x78e   :  { %v622_v21 = vsel %vm619_vm11, %v621_v17, %v617_v15 }
 0x78f   :  { %v635_v36 = vsub.f32 1.0, %v622_v21  ;;  %v641_v38 = vmul.f32 %v622_v21, %v1781_v33 }
 0x7cb   :  { %v626_v18 = vpop.permute.xlu2 %625 }
 0x7cc   :  { %v628_v22 = vmul.f32 %v626_v18, %v622_v21 }
 0x7ce   :  { %630 = vrot.lane.b32.xlu1 %v628_v22, %s1480_s27 }
 0x7d3   :  { %v443_v24 = vpop.permute.xlu2 %442 }
 0x7d4   :  { %v445_v27 = vmul.f32 %v443_v24, %v440_v23 }
 0x7d6   :  { %v1798_v28 = vadd.f32 %v446_v25, %v445_v27 }
 0x7d8   :  { %515 = vrot.lane.b32.xlu1 %v1798_v28, %s1481_s5 }
 0x840   :  { %v631_v30 = vpop.permute.xlu1 %630 }
 0x841   :  { %v633_v31 = vadd.f32 %v631_v30, %v578_v57 }
 0x843   :  { %1395 = vtanh.f32 %v633_v31 }
 0x849   :  { %v1396_v32 = vpop.eup %1395 }
 0x84a   :  { %637 = vrot.lane.b32.xlu0 %v1396_v32, %s1481_s5  ;;  %v516_v34 = vpop.permute.xlu1 %515  ;;  %v109_v32 = vld [vmem:[%s2016_s0 + $0x18] sm:$0xff] }
 0x84b   :  { %1324 = vmatmul.msk.f32.vlgmr.msra.gmra.mxu2 %vm73_vm0, %v516_v34  ;;  %1313 = vmatmul.msk.f32.gmra.mxu1 %vm73_vm0, %v109_v32 }
 0x84c   :  { %921 = vmatpush.msra.mxu2 %v1669_v61 }
 0x84e   :  { %922 = vmatpush.msra.mxu2 %v1674_v62 }
 0x850   :  { %923 = vmatpush.msra.mxu2 %v1687_v2  ;;  %v513_v2 = vld [vmem:[#allocation3 + $0x10] sm:$0xff] }
 0x852   :  { %924 = vmatpush.msra.mxu2 %v1698_v6 }
 0x8bc   :  { %v638_v37 = vpop.permute.xlu0 %637 }
 0x8bd   :  { %v640_v39 = vmul.f32 %v638_v37, %v635_v36 }
 0x8bf   :  { %v1815_v40 = vadd.f32 %v641_v38, %v640_v39 }
 0x8c1   :  { %710 = vrot.lane.b32.xlu2 %v1815_v40, %s1481_s5 }
 0x8ce   :  { %v536_v61 = vpop.f32.mrf.mxu2 }
 0x8cf   :  { %v537_v62 = vadd.f32 %v1742_v19, %v536_v61 }
 0x8d1   :  { %560 = vrot.lane.b32.xlu0 %v537_v62, %s1480_s27  ;;  %v539_v6 = vadd.f32 %v537_v62, %v513_v2 }
 0x8d3   :  { %v1325_v41 = vmul.f32 -1.442695, %v539_v6 }
 0x8d5   :  { %1397 = vpow2.f32 %v1325_v41 }
 0x8db   :  { %v1398_v42 = vpop.eup %1397 }
 0x8dc   :  { %v543_v33 = vadd.f32 1.0, %v1398_v42 }
 0x8de   :  { %1399 = vrcp.f32 %v543_v33  ;;  %v555_v48 = vand.u32 2147483648, %v543_v33  ;;  %vm549_vm13 = vweird.f32 %v543_v33  ;;  %v553_v49 = vand.u32 2147483647, %v543_v33 }
 0x8e0   :  { %v556_v10 = vor.u32 1.1754944e-38, %v555_v48  ;;  %vm554_vm15 = vcmp.eq.f32.partialorder %v553_v49, 8.507059e+37 }
 0x8e4   :  { %v1400_v43 = vpop.eup %1399 }
 0x8e5   :  { %v545_v44 = vmul.f32 %v1400_v43, %v543_v33  ;;  %vm550_vm12 = vweird.f32 %v1400_v43 }
 0x8e6   :  { %vm551_vm14 = vmor %vm549_vm13, %vm550_vm12 }
 0x8e7   :  { %v546_v45 = vsub.f32 1.0, %v545_v44 }
 0x8e9   :  { %v547_v46 = vmul.f32 %v1400_v43, %v546_v45 }
 0x8eb   :  { %v548_v47 = vadd.f32 %v1400_v43, %v547_v46 }
 0x8ed   :  { %v552_v50 = vsel %vm551_vm14, %v1400_v43, %v548_v47 }
 0x8ee   :  { %v557_v51 = vsel %vm554_vm15, %v556_v10, %v552_v50 }
 0x8ef   :  { %v570_v25 = vsub.f32 1.0, %v557_v51  ;;  %v576_v29 = vmul.f32 %v557_v51, %v1798_v28  ;;  %v164_v28 = vpop.f32.mrf.mxu1 }
 0x8f0   :  { %v165_v37 = vadd.f32 %v1736_v16, %v164_v28 }
 0x8f2   :  { %176 = vst.msk [vmem:[#allocation3 + $0x18] sm:$0xff] %vm103_vm1, %v165_v37 }
 0x91b   :  { %v711_v26 = vpop.permute.xlu2 %710 }
 0x91c   :  { %1330 = vmatmul.msk.f32.vlgmr.msrb.gmra.mxu2 %vm73_vm0, %v711_v26 }
 0x943   :  { %v561_v52 = vpop.permute.xlu0 %560 }
 0x944   :  { %v563_v53 = vmul.f32 %v561_v52, %v557_v51 }
 0x946   :  { %565 = vrot.lane.b32.xlu2 %v563_v53, %s1480_s27 }
 0x99f   :  { %v731_v54 = vpop.f32.mrf.mxu2 }
 0x9a0   :  { %v732_v55 = vadd.f32 %v1649_v13, %v731_v54  ;;  %v566_v56 = vpop.permute.xlu2 %565 }
 0x9a1   :  { %v568_v57 = vadd.f32 %v566_v56, %v513_v2 }
 0x9a2   :  { %755 = vrot.lane.b32.xlu1 %v732_v55, %s1480_s27  ;;  %v734_v60 = vadd.f32 %v732_v55, %v708_v59 }
 0x9a3   :  { %1401 = vtanh.f32 %v568_v57  ;;  %v838_v57 = vld [vmem:[#allocation2 + $0xa] sm:$0x3] }
 0x9a4   :  { %v1331_v63 = vmul.f32 -1.442695, %v734_v60 }
 0x9a6   :  { %1403 = vpow2.f32 %v1331_v63 }
 0x9a9   :  { %v1402_v58 = vpop.eup %1401 }
 0x9aa   :  { %572 = vrot.lane.b32.xlu1 %v1402_v58, %s1481_s5 }
 0x9ac   :  { %v1404_v0 = vpop.eup %1403 }
 0x9ad   :  { %v738_v4 = vadd.f32 1.0, %v1404_v0 }
 0x9af   :  { %1405 = vrcp.f32 %v738_v4  ;;  %v750_v15 = vand.u32 2147483648, %v738_v4  ;;  %vm744_vm3 = vweird.f32 %v738_v4  ;;  %v748_v17 = vand.u32 2147483647, %v738_v4 }
 0x9b1   :  { %v751_v21 = vor.u32 1.1754944e-38, %v750_v15  ;;  %vm749_vm5 = vcmp.eq.f32.partialorder %v748_v17, 8.507059e+37 }
 0x9b5   :  { %v1406_v8 = vpop.eup %1405 }
 0x9b6   :  { %v740_v11 = vmul.f32 %v1406_v8, %v738_v4  ;;  %vm745_vm2 = vweird.f32 %v1406_v8 }
 0x9b7   :  { %vm746_vm4 = vmor %vm744_vm3, %vm745_vm2 }
 0x9b8   :  { %v741_v9 = vsub.f32 1.0, %v740_v11 }
 0x9ba   :  { %v742_v12 = vmul.f32 %v1406_v8, %v741_v9 }
 0x9bc   :  { %v743_v14 = vadd.f32 %v1406_v8, %v742_v12 }
 0x9be   :  { %v747_v18 = vsel %vm746_vm4, %v1406_v8, %v743_v14 }
 0x9bf   :  { %v752_v23 = vsel %vm749_vm5, %v751_v21, %v747_v18 }
 0x9c0   :  { %v765_v38 = vsub.f32 1.0, %v752_v23  ;;  %v771_v61 = vmul.f32 %v752_v23, %v1815_v40 }
 0xa14   :  { %v756_v22 = vpop.permute.xlu1 %755 }
 0xa15   :  { %v758_v24 = vmul.f32 %v756_v22, %v752_v23 }
 0xa17   :  { %760 = vrot.lane.b32.xlu0 %v758_v24, %s1480_s27 }
 0xa1c   :  { %v573_v27 = vpop.permute.xlu1 %572 }
 0xa1d   :  { %v575_v30 = vmul.f32 %v573_v27, %v570_v25 }
 0xa1f   :  { %v1828_v31 = vadd.f32 %v576_v29, %v575_v30  ;;  %v110_v30 = vld [vmem:[%s2016_s0 + $0x20] sm:$0xff] }
 0xa20   :  { %1314 = vmatmul.msk.f32.gmra.mxu1 %vm73_vm0, %v110_v30 }
 0xa21   :  { %645 = vrot.lane.b32.xlu0 %v1828_v31, %s1481_s5 }
 0xa89   :  { %v761_v34 = vpop.permute.xlu0 %760 }
 0xa8a   :  { %v763_v20 = vadd.f32 %v761_v34, %v708_v59 }
 0xa8c   :  { %1407 = vtanh.f32 %v763_v20 }
 0xa92   :  { %v1408_v35 = vpop.eup %1407 }
 0xa93   :  { %767 = vrot.lane.b32.xlu2 %v1408_v35, %s1481_s5  ;;  %v646_v36 = vpop.permute.xlu0 %645 }
 0xa94   :  { %1328 = vmatmul.msk.f32.vlgmr.msra.gmra.mxu0 %vm73_vm0, %v646_v36 }
 0xa95   :  { %1051 = vmatpush.msra.mxu0 %v1596_v1 }
 0xa97   :  { %1052 = vmatpush.msra.mxu0 %v1605_v3 }
 0xa99   :  { %1053 = vmatpush.msra.mxu0 %v1613_v5  ;;  %v643_v5 = vld [vmem:[#allocation3 + $0x18] sm:$0xff] }
 0xa9b   :  { %1054 = vmatpush.msra.mxu0 %v1621_v7 }
 0xaed   :  { %v768_v39 = vpop.permute.xlu2 %767 }
 0xaee   :  { %v770_v62 = vmul.f32 %v768_v39, %v765_v38 }
 0xaf0   :  { %v1845_v2 = vadd.f32 %v771_v61, %v770_v62 }
 0xaf2   :  { %840 = vrot.lane.b32.xlu1 %v1845_v2, %s1481_s5 }
 0xb11   :  { %v666_v1 = vpop.f32.mrf.mxu0 }
 0xb12   :  { %v667_v3 = vadd.f32 %v1742_v19, %v666_v1 }
 0xb14   :  { %690 = vrot.lane.b32.xlu2 %v667_v3, %s1480_s27  ;;  %v669_v7 = vadd.f32 %v667_v3, %v643_v5 }
 0xb16   :  { %v1329_v6 = vmul.f32 -1.442695, %v669_v7  ;;  %v968_v7 = vld [vmem:[#allocation2 + $0xc] sm:$0x3] }
 0xb18   :  { %1409 = vpow2.f32 %v1329_v6 }
 0xb1e   :  { %v1410_v41 = vpop.eup %1409 }
 0xb1f   :  { %v673_v26 = vadd.f32 1.0, %v1410_v41 }
 0xb21   :  { %1411 = vrcp.f32 %v673_v26  ;;  %v685_v46 = vand.u32 2147483648, %v673_v26  ;;  %vm679_vm7 = vweird.f32 %v673_v26  ;;  %v683_v47 = vand.u32 2147483647, %v673_v26 }
 0xb23   :  { %v686_v49 = vor.u32 1.1754944e-38, %v685_v46  ;;  %vm684_vm9 = vcmp.eq.f32.partialorder %v683_v47, 8.507059e+37 }
 0xb27   :  { %v1412_v42 = vpop.eup %1411 }
 0xb28   :  { %v675_v40 = vmul.f32 %v1412_v42, %v673_v26  ;;  %vm680_vm6 = vweird.f32 %v1412_v42 }
 0xb29   :  { %vm681_vm8 = vmor %vm679_vm7, %vm680_vm6 }
 0xb2a   :  { %v676_v33 = vsub.f32 1.0, %v675_v40 }
 0xb2c   :  { %v677_v43 = vmul.f32 %v1412_v42, %v676_v33 }
 0xb2e   :  { %v678_v45 = vadd.f32 %v1412_v42, %v677_v43 }
 0xb30   :  { %v682_v48 = vsel %vm681_vm8, %v1412_v42, %v678_v45 }
 0xb31   :  { %v687_v10 = vsel %vm684_vm9, %v686_v49, %v682_v48 }
 0xb32   :  { %v700_v23 = vsub.f32 1.0, %v687_v10  ;;  %v706_v25 = vmul.f32 %v687_v10, %v1828_v31  ;;  %v167_v31 = vpop.f32.mrf.mxu1 }
 0xb33   :  { %v168_v36 = vadd.f32 %v1736_v16, %v167_v31 }
 0xb35   :  { %177 = vst.msk [vmem:[#allocation3 + $0x20] sm:$0xff] %vm103_vm1, %v168_v36 }
 0xb64   :  { %v841_v44 = vpop.permute.xlu1 %840 }
 0xb65   :  { %1334 = vmatmul.msk.f32.vlgmr.msrb.gmra.mxu0 %vm73_vm0, %v841_v44 }
 0xb6e   :  { %v691_v50 = vpop.permute.xlu2 %690 }
 0xb6f   :  { %v693_v51 = vmul.f32 %v691_v50, %v687_v10 }
 0xb71   :  { %695 = vrot.lane.b32.xlu1 %v693_v51, %s1480_s27 }
 0xbe2   :  { %v861_v52 = vpop.f32.mrf.mxu0 }
 0xbe3   :  { %v862_v53 = vadd.f32 %v1649_v13, %v861_v52  ;;  %v696_v54 = vpop.permute.xlu1 %695 }
 0xbe4   :  { %v698_v55 = vadd.f32 %v696_v54, %v643_v5  ;;  %v773_v54 = vld [vmem:[#allocation3 + $0x20] sm:$0xff] }
 0xbe5   :  { %885 = vrot.lane.b32.xlu0 %v862_v53, %s1480_s27  ;;  %v864_v58 = vadd.f32 %v862_v53, %v838_v57 }
 0xbe6   :  { %1413 = vtanh.f32 %v698_v55 }
 0xbe7   :  { %v1335_v59 = vmul.f32 -1.442695, %v864_v58 }
 0xbe9   :  { %1415 = vpow2.f32 %v1335_v59 }
 0xbec   :  { %v1414_v56 = vpop.eup %1413 }
 0xbed   :  { %702 = vrot.lane.b32.xlu0 %v1414_v56, %s1481_s5 }
 0xbef   :  { %v1416_v60 = vpop.eup %1415 }
 0xbf0   :  { %v868_v63 = vadd.f32 1.0, %v1416_v60 }
 0xbf2   :  { %1417 = vrcp.f32 %v868_v63  ;;  %v880_v12 = vand.u32 2147483648, %v868_v63  ;;  %vm874_vm11 = vweird.f32 %v868_v63  ;;  %v878_v14 = vand.u32 2147483647, %v868_v63 }
 0xbf4   :  { %v881_v17 = vor.u32 1.1754944e-38, %v880_v12  ;;  %vm879_vm13 = vcmp.eq.f32.partialorder %v878_v14, 8.507059e+37 }
 0xbf8   :  { %v1418_v0 = vpop.eup %1417 }
 0xbf9   :  { %v870_v4 = vmul.f32 %v1418_v0, %v868_v63  ;;  %vm875_vm10 = vweird.f32 %v1418_v0 }
 0xbfa   :  { %vm876_vm12 = vmor %vm874_vm11, %vm875_vm10 }
 0xbfb   :  { %v871_v8 = vsub.f32 1.0, %v870_v4 }
 0xbfd   :  { %v872_v11 = vmul.f32 %v1418_v0, %v871_v8 }
 0xbff   :  { %v873_v9 = vadd.f32 %v1418_v0, %v872_v11 }
 0xc01   :  { %v877_v15 = vsel %vm876_vm12, %v1418_v0, %v873_v9 }
 0xc02   :  { %v882_v21 = vsel %vm879_vm13, %v881_v17, %v877_v15 }
 0xc03   :  { %v895_v28 = vsub.f32 1.0, %v882_v21  ;;  %v901_v38 = vmul.f32 %v882_v21, %v1845_v2 }
 0xc57   :  { %v886_v18 = vpop.permute.xlu0 %885 }
 0xc58   :  { %v888_v22 = vmul.f32 %v886_v18, %v882_v21 }
 0xc5a   :  { %890 = vrot.lane.b32.xlu2 %v888_v22, %s1480_s27 }
 0xc5f   :  { %v703_v24 = vpop.permute.xlu0 %702 }
 0xc60   :  { %v705_v27 = vmul.f32 %v703_v24, %v700_v23 }
 0xc62   :  { %v1858_v29 = vadd.f32 %v706_v25, %v705_v27 }
 0xc64   :  { %775 = vrot.lane.b32.xlu2 %v1858_v29, %s1481_s5 }
 0xcb4   :  { %v891_v32 = vpop.permute.xlu2 %890 }
 0xcb5   :  { %v893_v34 = vadd.f32 %v891_v32, %v838_v57  ;;  %v1451_v32 = vld [vmem:[%s1987_s6] ss:$0 sm:$0xff] }
 0xcb7   :  { %1419 = vtanh.f32 %v893_v34 }
 0xcbd   :  { %v1420_v20 = vpop.eup %1419 }
 0xcbe   :  { %897 = vrot.lane.b32.xlu1 %v1420_v20, %s1481_s5  ;;  %v776_v35 = vpop.permute.xlu2 %775 }
 0xcbf   :  { %1332 = vmatmul.msk.f32.vlgmr.msrb.gmra.mxu3 %vm73_vm0, %v776_v35  ;;  %v1033_v35 = vld [vmem:[#allocation2 + $0xe] sm:$0x3] }
 0xd30   :  { %v898_v37 = vpop.permute.xlu1 %897 }
 0xd31   :  { %v900_v39 = vmul.f32 %v898_v37, %v895_v28 }
 0xd33   :  { %v902_v61 = vadd.f32 %v901_v38, %v900_v39 }
 0xd35   :  { %970 = vrot.lane.b32.xlu0 %v902_v61, %s1481_s5 }
 0xd42   :  { %v796_v1 = vpop.f32.mrf.mxu3 }
 0xd43   :  { %v797_v10 = vadd.f32 %v1742_v19, %v796_v1 }
 0xd45   :  { %v799_v55 = vadd.f32 %v797_v10, %v773_v54 }
 0xd47   :  { %v1333_v56 = vmul.f32 -1.442695, %v799_v55 }
 0xda7   :  { %v971_v62 = vpop.permute.xlu0 %970 }
 0xda8   :  { %1338 = vmatmul.msk.f32.vlgmr.msra.gmra.mxu3 %vm73_vm0, %v971_v62 }
 0xe2b   :  { %v991_v3 = vpop.f32.mrf.mxu3 }
 0xe2c   :  { %v992_v5 = vadd.f32 %v1649_v13, %v991_v3 }
 0xe2e   :  { %1015 = vrot.lane.b32.xlu1 %v992_v5, %s1480_s27  ;;  %v994_v6 = vadd.f32 %v992_v5, %v968_v7 }
 0xe30   :  { %v1339_v41 = vmul.f32 -1.442695, %v994_v6 }
 0xe32   :  { %1421 = vpow2.f32 %v1339_v41 }
 0xe38   :  { %v1422_v26 = vpop.eup %1421 }
 0xe39   :  { %v998_v42 = vadd.f32 1.0, %v1422_v26 }
 0xe3b   :  { %1423 = vrcp.f32 %v998_v42  ;;  %v1010_v45 = vand.u32 2147483648, %v998_v42  ;;  %vm1004_vm15 = vweird.f32 %v998_v42  ;;  %v1008_v46 = vand.u32 2147483647, %v998_v42 }
 0xe3d   :  { %v1011_v47 = vor.u32 1.1754944e-38, %v1010_v45  ;;  %vm1009_vm3 = vcmp.eq.f32.partialorder %v1008_v46, 8.507059e+37  ;;  %v111_v45 = vld [vmem:[%s2016_s0 + $0x28] sm:$0xff] }
 0xe3e   :  { %1315 = vmatmul.msk.f32.gmra.mxu1 %vm73_vm0, %v111_v45 }
 0xe41   :  { %v1424_v2 = vpop.eup %1423 }
 0xe42   :  { %v1000_v40 = vmul.f32 %v1424_v2, %v998_v42  ;;  %vm1005_vm14 = vweird.f32 %v1424_v2 }
 0xe43   :  { %vm1006_vm2 = vmor %vm1004_vm15, %vm1005_vm14 }
 0xe44   :  { %v1001_v33 = vsub.f32 1.0, %v1000_v40 }
 0xe46   :  { %v1002_v43 = vmul.f32 %v1424_v2, %v1001_v33 }
 0xe48   :  { %v1003_v44 = vadd.f32 %v1424_v2, %v1002_v43 }
 0xe4a   :  { %v1007_v13 = vsel %vm1006_vm2, %v1424_v2, %v1003_v44 }
 0xe4b   :  { %v1012_v49 = vsel %vm1009_vm3, %v1011_v47, %v1007_v13 }
 0xe4c   :  { %v1025_v19 = vsub.f32 1.0, %v1012_v49  ;;  %v1031_v8 = vmul.f32 %v1012_v49, %v902_v61 }
 0xea0   :  { %v1016_v48 = vpop.permute.xlu1 %1015 }
 0xea1   :  { %v1018_v50 = vmul.f32 %v1016_v48, %v1012_v49 }
 0xea3   :  { %1020 = vrot.lane.b32.xlu2 %v1018_v50, %s1480_s27  ;;  %v1135_v50 = vld [vmem:[%s1993_s12 + $0x18] sm:$0xff] }
 0xea4   :  { %1155 = vmatpush.msrb.mxu3 %v1135_v50 }
 0xeab   :  { %820 = vrot.lane.b32.xlu2 %v797_v10, %s1480_s27  ;;  %v1134_v10 = vld [vmem:[%s1993_s12 + $0x10] sm:$0xff] }
 0xeac   :  { %1156 = vmatpush.msrb.mxu3 %v1134_v10 }
 0xefd   :  { %v1021_v51 = vpop.permute.xlu2 %1020 }
 0xefe   :  { %v1023_v52 = vadd.f32 %v1021_v51, %v968_v7  ;;  %v1133_v51 = vld [vmem:[%s1993_s12 + $0x8] sm:$0xff] }
 0xeff   :  { %1157 = vmatpush.msrb.mxu3 %v1133_v51 }
 0xf00   :  { %1425 = vtanh.f32 %v1023_v52  ;;  %v1131_v52 = vld [vmem:[%s2017_s15] sm:$0x3] }
 0xf01   :  { %1427 = vpow2.f32 %v1333_v56 }
 0xf05   :  { %v821_v21 = vpop.permute.xlu2 %820 }
 0xf06   :  { %v1426_v53 = vpop.eup %1425 }
 0xf07   :  { %1027 = vrot.lane.b32.xlu0 %v1426_v53, %s1481_s5  ;;  %v1428_v57 = vpop.eup %1427 }
 0xf08   :  { %v803_v58 = vadd.f32 1.0, %v1428_v57  ;;  %v1101_v57 = vld [vmem:[%s1992_s11 + $0x18] sm:$0xff] }
 0xf09   :  { %1123 = vmatpush.msrb.mxu2 %v1101_v57  ;;  %v1211_v57 = vld [vmem:[%s2018_s1] sm:$0xff] }
 0xf0a   :  { %1429 = vrcp.f32 %v803_v58  ;;  %v815_v14 = vand.u32 2147483648, %v803_v58  ;;  %vm809_vm5 = vweird.f32 %v803_v58  ;;  %v813_v15 = vand.u32 2147483647, %v803_v58 }
 0xf0c   :  { %v816_v18 = vor.u32 1.1754944e-38, %v815_v14  ;;  %vm814_vm7 = vcmp.eq.f32.partialorder %v813_v15, 8.507059e+37 }
 0xf10   :  { %v1430_v59 = vpop.eup %1429 }
 0xf11   :  { %v805_v60 = vmul.f32 %v1430_v59, %v803_v58  ;;  %vm810_vm4 = vweird.f32 %v1430_v59  ;;  %v1100_v58 = vld [vmem:[%s1992_s11 + $0x10] sm:$0xff] }
 0xf12   :  { %vm811_vm6 = vmor %vm809_vm5, %vm810_vm4  ;;  %1124 = vmatpush.msrb.mxu2 %v1100_v58  ;;  %vm1209_vm5 = vcmask 254976  }
 0xf13   :  { %v806_v63 = vsub.f32 1.0, %v805_v60  ;;  %v1099_v60 = vld [vmem:[%s1992_s11 + $0x8] sm:$0xff] }
 0xf14   :  { %1125 = vmatpush.msrb.mxu2 %v1099_v60 }
 0xf15   :  { %v807_v0 = vmul.f32 %v1430_v59, %v806_v63  ;;  %v1098_v63 = vld [vmem:[%s1992_s11] sm:$0xff] }
 0xf16   :  { %1126 = vmatpush.msrb.mxu2 %v1098_v63 }
 0xf17   :  { %v808_v9 = vadd.f32 %v1430_v59, %v807_v0 }
 0xf19   :  { %v812_v17 = vsel %vm811_vm6, %v1430_v59, %v808_v9  ;;  %v1358_v9 = vld [vmem:[%s1994_s13] ss:$0 sm:$0xff]  ;;  %vm1247_vm6 = vcmask 257024  }
 0xf1a   :  { %v817_v22 = vsel %vm814_vm7, %v816_v18, %v812_v17  ;;  %vm1250_vm7 = vcmask 261124  }
 0xf1b   :  { %v823_v23 = vmul.f32 %v821_v21, %v817_v22  ;;  %v830_v2 = vsub.f32 1.0, %v817_v22  ;;  %v836_v33 = vmul.f32 %v817_v22, %v1858_v29  ;;  %v170_v29 = vpop.f32.mrf.mxu1 }
 0xf1c   :  { %v171_v49 = vadd.f32 %v1736_v16, %v170_v29  ;;  %v1132_v16 = vld [vmem:[%s1993_s12] sm:$0xff]  ;;  %s1295_s12 = sshll.u32 %s2001_s20, 4  ;;  %s1296_s12 = int_to_ptr.hbm [resolvable:$true] %s1295_s12 }
 0xf1d   :  { %1158 = vmatpush.msrb.mxu3 %v1132_v16 }
 0xf1e   :  { %178 = vst.msk [vmem:[#allocation3 + $0x28] sm:$0xff] %vm103_vm1, %v171_v49  ;;  %1343 = vmatmul.msk.f32.vlgmr.msrb.gmra.mxu3 %vm73_vm0, %v1131_v52 }
 0xf79   :  { %v1028_v4 = vpop.permute.xlu0 %1027 }
 0xf7a   :  { %v1030_v11 = vmul.f32 %v1028_v4, %v1025_v19  ;;  %v1357_v19 = vld [vmem:[%s1995_s14] ss:$0 sm:$0xff] }
 0xf7c   :  { %v1879_v12 = vadd.f32 %v1031_v8, %v1030_v11 }
 0xf7e   :  { %1035 = vrot.lane.b32.xlu1 %v1879_v12, %s1481_s5 }
 0xf86   :  { %825 = vrot.lane.b32.xlu1 %v823_v23, %s1480_s27 }
 0xfa1   :  { %v1160_v4 = vpop.f32.mrf.mxu3 }
 0xfa2   :  { %v1161_v8 = vadd.f32 %v1357_v19, %v1160_v4  ;;  %v1483_v4 = vmov 1  }
 0xfa3   :  { %1352 = vset.pattern.permute.xlu0 %v1483_v4 }
 0xff0   :  { %v1036_v24 = vpop.permute.xlu1 %1035 }
 0xff1   :  { %1340 = vmatmul.msk.f32.vlgmr.msra.gmra.mxu0 %vm73_vm0, %v1036_v24 }
 0xff8   :  { %v826_v25 = vpop.permute.xlu1 %825 }
 0xff9   :  { %v828_v27 = vadd.f32 %v826_v25, %v773_v54 }
 0xffb   :  { %1431 = vtanh.f32 %v828_v27 }
0x1001   :  { %v1432_v20 = vpop.eup %1431 }
0x106e   :  { %v1056_v30 = vpop.f32.mrf.mxu0 }
0x106f   :  { %v1057_v34 = vadd.f32 %v1451_v32, %v1056_v30 }
0x1071   :  { %1080 = vrot.lane.b32.xlu0 %v1057_v34, %s1480_s27  ;;  %v1059_v31 = vadd.f32 %v1057_v34, %v1033_v35 }
0x1073   :  { %v1341_v36 = vmul.f32 -1.442695, %v1059_v31 }
0x1075   :  { %1433 = vpow2.f32 %v1341_v36 }
0x1079   :  { %832 = vrot.lane.b32.xlu0 %v1432_v20, %s1481_s5 }
0x107b   :  { %v1434_v28 = vpop.eup %1433 }
0x107c   :  { %v1063_v37 = vadd.f32 1.0, %v1434_v28  ;;  %v1452_v28 = vld [vmem:[%s1991_s10] ss:$0 sm:$0xff] }
0x107e   :  { %1435 = vrcp.f32 %v1063_v37  ;;  %v1075_v3 = vand.u32 2147483648, %v1063_v37  ;;  %vm1069_vm9 = vweird.f32 %v1063_v37  ;;  %v1073_v5 = vand.u32 2147483647, %v1063_v37 }
0x1080   :  { %v1076_v6 = vor.u32 1.1754944e-38, %v1075_v3  ;;  %vm1074_vm11 = vcmp.eq.f32.partialorder %v1073_v5, 8.507059e+37 }
0x1084   :  { %v1436_v38 = vpop.eup %1435 }
0x1085   :  { %v1065_v39 = vmul.f32 %v1436_v38, %v1063_v37  ;;  %vm1070_vm8 = vweird.f32 %v1436_v38 }
0x1086   :  { %vm1071_vm10 = vmor %vm1069_vm9, %vm1070_vm8  ;;  %vm1277_vm8 = vcmask 1041409   ;;  %vm1282_vm9 = vcmask 25600  }
0x1087   :  { %v1066_v61 = vsub.f32 1.0, %v1065_v39 }
0x1089   :  { %v1067_v62 = vmul.f32 %v1436_v38, %v1066_v61 }
0x108b   :  { %v1068_v1 = vadd.f32 %v1436_v38, %v1067_v62 }
0x108d   :  { %v1072_v7 = vsel %vm1071_vm10, %v1436_v38, %v1068_v1  ;;  %v903_v38 = vld [vmem:[#allocation3 + $0x28] sm:$0xff] }
0x108e   :  { %v1077_v26 = vsel %vm1074_vm11, %v1076_v6, %v1072_v7 }
0x108f   :  { %v1090_v53 = vsub.f32 1.0, %v1077_v26  ;;  %v1096_v55 = vmul.f32 %v1077_v26, %v1879_v12 }
0x10e3   :  { %v1081_v41 = vpop.permute.xlu0 %1080 }
0x10e4   :  { %v1083_v42 = vmul.f32 %v1081_v41, %v1077_v26 }
0x10e6   :  { %1085 = vrot.lane.b32.xlu2 %v1083_v42, %s1480_s27 }
0x10eb   :  { %v833_v40 = vpop.permute.xlu0 %832 }
0x10ec   :  { %v835_v43 = vmul.f32 %v833_v40, %v830_v2 }
0x10ee   :  { %v1892_v44 = vadd.f32 %v836_v33, %v835_v43 }
0x10f0   :  { %905 = vrot.lane.b32.xlu2 %v1892_v44, %s1481_s5 }
0x1140   :  { %v1086_v46 = vpop.permute.xlu2 %1085 }
0x1141   :  { %v1088_v13 = vadd.f32 %v1086_v46, %v1033_v35 }
0x1143   :  { %1437 = vtanh.f32 %v1088_v13 }
0x1149   :  { %v1438_v47 = vpop.eup %1437 }
0x114a   :  { %1092 = vrot.lane.b32.xlu1 %v1438_v47, %s1481_s5  ;;  %v906_v48 = vpop.permute.xlu2 %905 }
0x114b   :  { %1336 = vmatmul.msk.f32.vlgmr.msra.gmra.mxu2 %vm73_vm0, %v906_v48 }
0x1152   :  { %1184 = vrot.lane.b32.xlu1 %v1161_v8, %s1480_s27 }
0x115a   :  { %1200 = vrot.lane.b32.xlu1 %v1131_v52, %s1482_s8 }
0x11bc   :  { %v1093_v54 = vpop.permute.xlu1 %1092 }
0x11bd   :  { %v1095_v56 = vmul.f32 %v1093_v54, %v1090_v53  ;;  %v1214_v54 = vld [vmem:[%s2018_s1 + $0x18] sm:$0xff] }
0x11be   :  { %1233 = vmatpush.msrb.mxu0 %v1214_v54 }
0x11bf   :  { %v1097_v59 = vadd.f32 %v1096_v55, %v1095_v56  ;;  %v1213_v55 = vld [vmem:[%s2018_s1 + $0x10] sm:$0xff]  ;;  %v1212_v56 = vld [vmem:[%s2018_s1 + $0x8] sm:$0xff] }
0x11c0   :  { %1234 = vmatpush.msrb.mxu0 %v1213_v55 }
0x11c1   :  { %1107 = vrot.lane.b32.xlu0 %v1097_v59, %s1481_s5 }
0x11c2   :  { %1235 = vmatpush.msrb.mxu0 %v1212_v56 }
0x11c4   :  { %v1185_v35 = vpop.permute.xlu1 %1184  ;;  %1236 = vmatpush.msrb.mxu0 %v1211_v57 }
0x11cc   :  { %v1201_v48 = vpop.permute.xlu1 %1200 }
0x11ce   :  { %v926_v11 = vpop.f32.mrf.mxu2 }
0x11cf   :  { %v927_v37 = vadd.f32 %v1452_v28, %v926_v11 }
0x11d1   :  { %v929_v39 = vadd.f32 %v927_v37, %v903_v38 }
0x11d3   :  { %v1337_v61 = vmul.f32 -1.442695, %v929_v39 }
0x1233   :  { %v1108_v0 = vpop.permute.xlu0 %1107 }
0x1234   :  { %1342 = vmatmul.msk.f32.vlgmr.msrb.gmra.mxu2 %vm73_vm0, %v1108_v0 }
0x12b7   :  { %v1128_v12 = vpop.f32.mrf.mxu2 }
0x12b8   :  { %v1129_v14 = vadd.f32 %v1358_v9, %v1128_v12 }
0x12ba   :  { %v1163_v15 = vadd.f32 %v1161_v8, %v1129_v14 }
0x12bc   :  { %v1344_v17 = vmul.f32 -1.442695, %v1163_v15 }
0x12be   :  { %1439 = vpow2.f32 %v1344_v17 }
0x12c4   :  { %v1440_v18 = vpop.eup %1439 }
0x12c5   :  { %v1167_v21 = vadd.f32 1.0, %v1440_v18  ;;  %v1360_v18 = vld [vmem:[%s1997_s16] ss:$0 sm:$0xff] }
0x12c7   :  { %1441 = vrcp.f32 %v1167_v21  ;;  %v1179_v25 = vand.u32 2147483648, %v1167_v21  ;;  %v1177_v30 = vand.u32 2147483647, %v1167_v21  ;;  %vm1173_vm12 = vweird.f32 %v1167_v21 }
0x12c8   :  { %1443 = vpow2.f32 %v1337_v61 }
0x12c9   :  { %v1180_v34 = vor.u32 1.1754944e-38, %v1179_v25  ;;  %vm1178_vm14 = vcmp.eq.f32.partialorder %v1177_v30, 8.507059e+37 }
0x12cd   :  { %v1442_v22 = vpop.eup %1441 }
0x12ce   :  { %v1169_v23 = vmul.f32 %v1442_v22, %v1167_v21  ;;  %vm1174_vm1 = vweird.f32 %v1442_v22  ;;  %v1444_v62 = vpop.eup %1443 }
0x12cf   :  { %vm1175_vm13 = vmor %vm1173_vm12, %vm1174_vm1  ;;  %v933_v1 = vadd.f32 1.0, %v1444_v62 }
0x12d0   :  { %v1170_v24 = vsub.f32 1.0, %v1169_v23  ;;  %v1273_v23 = vlaneseq }
0x12d1   :  { %1445 = vrcp.f32 %v933_v1  ;;  %v945_v2 = vand.u32 2147483648, %v933_v1  ;;  %vm939_vm2 = vweird.f32 %v933_v1  ;;  %v943_v40 = vand.u32 2147483647, %v933_v1 }
0x12d2   :  { %v1171_v27 = vmul.f32 %v1442_v22, %v1170_v24  ;;  %v1274_v24 = vand.u32 127, %v1273_v23 }
0x12d3   :  { %v946_v43 = vor.u32 1.1754944e-38, %v945_v2  ;;  %vm944_vm4 = vcmp.eq.f32.partialorder %v943_v40, 8.507059e+37 }
0x12d4   :  { %v1172_v32 = vadd.f32 %v1442_v22, %v1171_v27 }
0x12d6   :  { %v1176_v20 = vsel %vm1175_vm13, %v1442_v22, %v1172_v32 }
0x12d7   :  { %v1181_v31 = vsel %vm1178_vm14, %v1180_v34, %v1176_v20  ;;  %v1446_v3 = vpop.eup %1445 }
0x12d8   :  { %v1187_v36 = vmul.f32 %v1185_v35, %v1181_v31  ;;  %v935_v5 = vmul.f32 %v1446_v3, %v933_v1  ;;  %vm940_vm15 = vweird.f32 %v1446_v3  ;;  %v1194_v29 = vsub.f32 1.0, %v1181_v31 }
0x12d9   :  { %vm941_vm3 = vmor %vm939_vm2, %vm940_vm15  ;;  %v1203_v50 = vmul.f32 %v1201_v48, %v1181_v31 }
0x12da   :  { %1189 = vrot.lane.b32.xlu2 %v1187_v36, %s1480_s27  ;;  %v936_v7 = vsub.f32 1.0, %v935_v5 }
0x12dc   :  { %v937_v6 = vmul.f32 %v1446_v3, %v936_v7 }
0x12de   :  { %v938_v42 = vadd.f32 %v1446_v3, %v937_v6 }
0x12e0   :  { %v942_v33 = vsel %vm941_vm3, %v1446_v3, %v938_v42 }
0x12e1   :  { %v947_v46 = vsel %vm944_vm4, %v946_v43, %v942_v33 }
0x12e2   :  { %950 = vrot.lane.b32.xlu2 %v927_v37, %s1480_s27  ;;  %v960_v58 = vsub.f32 1.0, %v947_v46  ;;  %v966_v60 = vmul.f32 %v947_v46, %v1892_v44  ;;  %v1359_v44 = vld [vmem:[%s1998_s17] ss:$0 sm:$0xff] }
0x1334   :  { %v1190_v41 = vpop.permute.xlu2 %1189 }
0x1335   :  { %v1192_v26 = vadd.f32 %v1190_v41, %v1129_v14 }
0x1337   :  { %1447 = vtanh.f32 %v1192_v26 }
0x133c   :  { %v951_v45 = vpop.permute.xlu2 %950 }
0x133d   :  { %v1448_v13 = vpop.eup %1447  ;;  %v953_v47 = vmul.f32 %v951_v45, %v947_v46 }
0x133e   :  { %1196 = vrot.lane.b32.xlu0 %v1448_v13, %s1481_s5 }
0x133f   :  { %955 = vrot.lane.b32.xlu1 %v953_v47, %s1480_s27 }
0x13b0   :  { %v1197_v49 = vpop.permute.xlu0 %1196 }
0x13b1   :  { %v1199_v10 = vmul.f32 %v1197_v49, %v1194_v29  ;;  %v956_v51 = vpop.permute.xlu1 %955 }
0x13b2   :  { %v958_v16 = vadd.f32 %v956_v51, %v903_v38 }
0x13b3   :  { %v1204_v52 = vadd.f32 %v1203_v50, %v1199_v10 }
0x13b4   :  { %1449 = vtanh.f32 %v958_v16 }
0x13b5   :  { %1206 = vrot.lane.b32.xlu0 %v1204_v52, %s1481_s5 }
0x13ba   :  { %v1450_v53 = vpop.eup %1449 }
0x13bb   :  { %962 = vrot.lane.b32.xlu2 %v1450_v53, %s1481_s5 }
0x1415   :  { %v963_v59 = vpop.permute.xlu2 %962 }
0x1416   :  { %v965_v63 = vmul.f32 %v963_v59, %v960_v58 }
0x1418   :  { %v967_v0 = vadd.f32 %v966_v60, %v965_v63 }
0x141a   :  { %1244 = vrot.lane.b32.xlu0 %v967_v0, %s1481_s5  ;;  %s1484_s5 = smov [#allocation5]  }
0x141b   :  { %s1293_s3 = sshll.u32 %s1484_s5, 4  ;;  %s1294_s3 = int_to_ptr.vmem [resolvable:$true] %s1293_s3 }
0x1427   :  { %v1207_v19 = vpop.permute.xlu0 %1206 }
0x1428   :  { %1210 = vst.msk [vmem:[#allocation5] sm:$0x3] %vm1209_vm5, %v1207_v19  ;;  %1345 = vmatmul.msk.f32.vlgmr.msrb.gmra.mxu0 %vm73_vm0, %v1207_v19  ;;  %vm1241_vm0 = vcmask 1024  }
0x1429   :  { %1298 = dma.vmem_to_hbm [thread:$0]  %s1294_s3, 32, %s1296_s12, [#allocation6]  }
0x148c   :  { %v1245_v8 = vpop.permute.xlu0 %1244 }
0x148d   :  { %1248 = vst.msk [vmem:[#allocation4] sm:$0xf] %vm1247_vm6, %v1245_v8 }
0x148e   :  { %1251 = vst.msk [vmem:[#allocation4] sm:$0xf0] %vm1250_vm7, %v1245_v8 }
0x1494   :  { %v1252_v11 = vld [vmem:[#allocation4] sm:$0xf] }
0x1495   :  { %v1253_v9 = vld [vmem:[#allocation4 + $0x4] sm:$0xf]  ;;  %v1258_v12 = vmul.f32 %v1359_v44, %v1252_v11 }
0x1496   :  { %v1259_v14 = vmul.f32 %v1359_v44, %v1253_v9 }
0x1497   :  { %v1260_v15 = vsel %vm1247_vm6, %v1258_v12, 0.0 }
0x1498   :  { %v1263_v17 = vsel %vm1247_vm6, %v1259_v14, 0.0  ;;  %1261 = vadd.xlane.f32.xlu1 %v1260_v15 }
0x1499   :  { %1264 = vadd.xlane.f32.xlu2 %v1263_v17 }
0x14a5   :  { %v1238_v21 = vpop.f32.mrf.mxu0 }
0x14a6   :  { %v1239_v22 = vadd.f32 %v1360_v18, %v1238_v21 }
0x14a8   :  { %1242 = vst.msk [vmem:[%s2000_s19] sm:$0x3] %vm1241_vm0, %v1239_v22  ;;  %1268 = vperm.xlu0 %1352, %v1239_v22  }
0x150b   :  { %v1262_v27 = vpop.xlane.xlu1 %1261 }
0x150c   :  { %v1265_v25 = vpop.xlane.xlu2 %1264  ;;  %v1275_v32 = vperm.slane %v1262_v27, %v1274_v24 }
0x150d   :  { %v1276_v30 = vperm.slane %v1265_v25, %v1274_v24 }
0x150f   :  { %v1278_v34 = vsel %vm1277_vm8, %v1276_v30, %v1275_v32 }
0x151a   :  { %v1269_v20 = vpop.permute.xlu0 %1268 }
0x151b   :  { %v1280_v35 = vadd.f32 %v1278_v34, %v1269_v20 }
0x151d   :  { %v1281_v31 = vmax.f32 %v1280_v35, 0.0 }
0x151f   :  { %1283 = vst.msk [vmem:[%s1999_s18] sm:$0x3] %vm1282_vm9, %v1281_v31 }
0x1520   :  { %1477 = dma.done.wait [#allocation6], 32  }
0x1521   :  { %1478 = vsyncadd [#allocation6], 4294967264 }
0x1522   :  { %1307 = vsyncpa [#allocation6], 1 }

</bundles_post_ra>
